<compile_context>
chip_gen: v6e
topology: v6e:2x2x1
jax: 0.10.0
libtpu: 0.0.40
codegen_flags: <defaults>
</compile_context>

<pallas_src>
import functools

import jax
import jax.numpy as jnp
from jax import lax
from jax.experimental import pallas as pl
from jax.experimental.pallas import tpu as pltpu

C_CH = 41     # n_inputs == n_outputs of the 1x1 Conv1d
L_SEQ = 256   # forced by BatchNorm1d(256) on the permuted tensor
BN_EPS = 1e-5
C_PAD = 48    # 41 padded to the sublane multiple of 8 (for VMEM sizing only)


def _mfuse_segments(x2d, w_bf, bias_col, gamma, beta, B, tl):
    """mfuse(x) evaluated on the internal (C, B*tl) layout.

    x2d: (C, B*tl) f32 (batch folded into the lane axis, 128-aligned segments).
    Returns a list of B per-batch (C, tl) outputs.
    """
    C = x2d.shape[0]

    # --- 1x1 Conv1d: ONE non-batched matmul W(41,41) @ X(41, B*tl) on the MXU.
    #     bf16 operands, f32 accumulation. ---
    y = lax.dot_general(
        w_bf, x2d.astype(jnp.bfloat16),
        dimension_numbers=(((1,), (0,)), ((), ())),
        preferred_element_type=jnp.float32)

    # --- bias + ReLU.  bias (C,1) lane-broadcasts inside the add; keeping the
    #     full-width broadcast live across both mfuse calls would cost ~24
    #     vregs, so the tiny per-call broadcast is the cheaper trade. ---
    y = jnp.maximum(y + bias_col, 0.0)

    # Per-batch lane segments (static, 128-aligned lane slices).
    segs = [y[:, b * tl:(b + 1) * tl] for b in range(B)]

    # --- BatchNorm1d(256): after the permute the BN "channel" is the L
    #     position.  Training-mode biased batch statistics over (batch, 41).
    #     One pass: var = E[y^2] - mean^2, clamped at 0. ---
    inv_n = 1.0 / float(B * C)
    s1 = segs[0].sum(axis=0, keepdims=True)                    # (1, tl)
    s2 = (segs[0] * segs[0]).sum(axis=0, keepdims=True)        # (1, tl)
    for seg in segs[1:]:
        s1 = s1 + seg.sum(axis=0, keepdims=True)
        s2 = s2 + (seg * seg).sum(axis=0, keepdims=True)
    mean = s1 * inv_n
    var = jnp.maximum(s2 * inv_n - mean * mean, 0.0)
    # Fold the BN affine into one scale/shift on the tiny (1, tl) shapes.
    scale = gamma * lax.rsqrt(var + BN_EPS)                    # (1, tl)
    shift = beta - mean * scale                                # (1, tl)
    segs = [seg * scale + shift for seg in segs]

    # --- nn.Softmax() with dim=None on a 3-D tensor defaults to dim=0 (batch):
    #     per (c, l), softmax across the batch segments. ---
    mx = segs[0]
    for seg in segs[1:]:
        mx = jnp.maximum(mx, seg)
    es = [jnp.exp(seg - mx) for seg in segs]
    denom = es[0]
    for e in es[1:]:
        denom = denom + e
    r = pl.reciprocal(denom, approx=True)                      # EUP slot

    # --- gate + tanh ---
    return [jnp.tanh((e * r) * seg) for e, seg in zip(es, segs)]


def _coupling_kernel(x1_ref, x2_ref, w_ref, bias_ref, gamma_ref, beta_ref,
                     t_ref, s_ref, *, sign):
    """Fused double-coupling step on one L-tile.

    t = x2 + sign * mfuse(x1)
    s = x1 + sign * mfuse(t)        (y2 == t never leaves VMEM)
    """
    B, C, tl = x1_ref.shape

    # Tiny parameter loads, shared by both mfuse applications.
    w_bf = w_ref[...].astype(jnp.bfloat16)       # (C, C) bf16, ~3 vregs
    bias_col = bias_ref[...]                     # (C, 1)
    gamma = gamma_ref[...]                       # (1, tl)
    beta = beta_ref[...]                         # (1, tl)

    # ---- t = x2 + sign * m(x1) ----
    # Relayout (B, C, tl) -> (C, B*tl): place the per-batch (C, tl) slabs side
    # by side along the lane axis (128-aligned segments, cheap vreg moves).
    x1_2d = jnp.concatenate([x1_ref[b] for b in range(B)], axis=-1)
    m1 = _mfuse_segments(x1_2d, w_bf, bias_col, gamma, beta, B, tl)

    t_segs = []
    for b in range(B):
        tb = x2_ref[b] + sign * m1[b]            # x2 slab read right where needed
        t_ref[b] = tb
        t_segs.append(tb)

    # ---- s = x1 + sign * m(t) ----
    t_2d = jnp.concatenate(t_segs, axis=-1)
    m2 = _mfuse_segments(t_2d, w_bf, bias_col, gamma, beta, B, tl)
    for b in range(B):
        # Re-read x1 from the ref here: shortens its live range instead of
        # holding it in vregs across both mfuse applications.
        s_ref[b] = x1_ref[b] + sign * m2[b]


def _select_tile(B, L):
    """L-tile choice (review: B-dependent).

    At small B a single 256-wide block wins (per-grid-step overhead ~0.35 us
    dominates and N=256 matches the v6e/v7x MXU width).  Only split L (and let
    megacore shard on v7x) when per-tile compute is large, i.e. large B.  The
    batch axis itself cannot be tiled: BN stats and the dim=0 softmax span the
    whole batch.
    """
    if B >= 16 and L % 256 == 0:
        return L // 2
    return L


def _coupled_call(x1, x2, w, bias, gamma, beta, *, sign):
    """Returns (t, s) with t = x2 + sign*m(x1), s = x1 + sign*m(t)."""
    B, C, L = x1.shape
    assert C == C_CH and L == L_SEQ, \
        "BatchNorm1d(256) in mfuse forces (C, L) == (41, 256)"
    tl = _select_tile(B, L)
    grid = (L // tl,)

    x_spec = pl.BlockSpec((B, C, tl), lambda l: (0, 0, l))
    w_spec = pl.BlockSpec((C, C), lambda l: (0, 0))
    b_spec = pl.BlockSpec((C, 1), lambda l: (0, 0))
    g_spec = pl.BlockSpec((1, tl), lambda l: (0, l))

    # VMEM limit sized from the actual per-step footprint (+ headroom), instead
    # of a blanket 32 MiB.  Scales with B since the batch axis is untileable.
    io_bytes = 2 * 4 * B * C_PAD * tl * 4          # 4 I/O blocks, double-buffered
    work_bytes = 16 * B * C_PAD * tl * 4           # generous in-kernel working set
    vmem_limit = int(1.5 * (io_bytes + work_bytes))
    vmem_limit = min(max(vmem_limit, 8 * 1024 * 1024), 100 * 1024 * 1024)

    # Advisory cost estimate for the whole fused call (2 mfuse applications).
    flops = 2 * (2 * B * L * C * C) + 2 * (18 * B * C * L)
    transcendentals = 2 * (2 * B * C * L + C * L + L)
    bytes_accessed = 4 * B * C * L * 4 + (C * C + C + 2 * L) * 4

    kern = functools.partial(_coupling_kernel, sign=float(sign))
    t, s = pl.pallas_call(
        kern,
        out_shape=(jax.ShapeDtypeStruct((B, C, L), jnp.float32),
                   jax.ShapeDtypeStruct((B, C, L), jnp.float32)),
        grid_spec=pltpu.PrefetchScalarGridSpec(
            num_scalar_prefetch=0,
            grid=grid,
            in_specs=[x_spec, x_spec, w_spec, b_spec, g_spec, g_spec],
            out_specs=[x_spec, x_spec],
        ),
        compiler_params=pltpu.CompilerParams(
            dimension_semantics=("parallel",),
            vmem_limit_bytes=vmem_limit,
        ),
        cost_estimate=pl.CostEstimate(
            flops=flops,
            transcendentals=transcendentals,
            bytes_accessed=bytes_accessed),
    )(x1, x2, w, bias, gamma, beta)
    return t, s


def init_coupling_params(key):
    """Deterministic synthetic parameters for the single mfuse (self.m) used in forward."""
    k_w, k_b = jax.random.split(key)
    # conv1 weight (out=41, in=41, k=1) ~ N(0, 0.1); weight_norm is identity at init.
    w = jax.random.normal(k_w, (C_CH, C_CH), jnp.float32) * 0.1          # (out, in)
    bound = float(1.0 / (C_CH ** 0.5))
    bias = jax.random.uniform(k_b, (C_CH, 1), jnp.float32, -bound, bound)
    gamma = jnp.ones((1, L_SEQ), jnp.float32)    # BN weight (per L "channel")
    beta = jnp.zeros((1, L_SEQ), jnp.float32)    # BN bias
    return w, bias, gamma, beta


def coupling_layer_forward(x1, x2, invertible, params):
    """x1, x2: (B, 41, 256) in PyTorch NCW layout (fed directly, no transposes).

    Returns (y3, y4) in the same layout."""
    w, bias, gamma, beta = params
    x1 = x1.astype(jnp.float32)
    x2 = x2.astype(jnp.float32)

    sign = 1.0 if invertible else -1.0
    t, s = _coupled_call(x1, x2, w, bias, gamma, beta, sign=sign)
    if invertible:
        # y2 = x2 + m(x1) = t ; y4 = x1 + m(y2) = s ; return (y3, y4) = (y2, y4)
        return (t, s)
    # y2 = x2 - m(x1) = t ; y3 = x1 - m(y2) = s ; return (y3, y4) = (y3, y2)
    return (s, t)


if __name__ == "__main__":
    key = jax.random.PRNGKey(0)
    k_p, k_x1, k_x2 = jax.random.split(key, 3)

    params = init_coupling_params(k_p)

    B = 2
    x1 = jax.random.normal(k_x1, (B, C_CH, L_SEQ), jnp.float32)
    x2 = jax.random.normal(k_x2, (B, C_CH, L_SEQ), jnp.float32)

    # non-invertible branch
    y3, y4 = coupling_layer_forward(x1, x2, invertible=False, params=params)
    jax.block_until_ready((y3, y4))

    # invertible branch
    z3, z4 = coupling_layer_forward(x1, x2, invertible=True, params=params)
    jax.block_until_ready((z3, z4))

    assert y3.shape == (B, C_CH, L_SEQ) and y4.shape == (B, C_CH, L_SEQ)
    assert z3.shape == (B, C_CH, L_SEQ) and z4.shape == (B, C_CH, L_SEQ)
    assert bool(jnp.all(jnp.isfinite(y3))) and bool(jnp.all(jnp.isfinite(y4)))
    assert bool(jnp.all(jnp.isfinite(z3))) and bool(jnp.all(jnp.isfinite(z4)))

    print("KERNEL_OK")
</pallas_src>

<mosaic_0001>
module attributes {stable_mosaic.version = 11 : i64} {
  func.func @_coupling_kernel(%arg0: i32, %arg1: memref<2x41x256xf32, #tpu.memory_space<vmem>>, %arg2: memref<2x41x256xf32, #tpu.memory_space<vmem>>, %arg3: memref<41x41xf32, #tpu.memory_space<vmem>>, %arg4: memref<41x1xf32, #tpu.memory_space<vmem>>, %arg5: memref<1x256xf32, #tpu.memory_space<vmem>>, %arg6: memref<1x256xf32, #tpu.memory_space<vmem>>, %arg7: memref<2x41x256xf32, #tpu.memory_space<vmem>>, %arg8: memref<2x41x256xf32, #tpu.memory_space<vmem>>) attributes {dimension_semantics = [#tpu.dimension_semantics<parallel>], iteration_bounds = array<i64: 1>, scalar_prefetch = 0 : i64, scratch_operands = 0 : i64, tpu.core_type = #tpu.core_type<tc>, window_params = [{transform_indices = @transform_0, window_bounds = array<i64: 2, 41, 256>}, {transform_indices = @transform_1, window_bounds = array<i64: 2, 41, 256>}, {pipeline_mode = #tpu.pipeline_mode<synchronous>, transform_indices = @transform_2, window_bounds = array<i64: 41, 41>}, {pipeline_mode = #tpu.pipeline_mode<synchronous>, transform_indices = @transform_3, window_bounds = array<i64: 41, 1>}, {transform_indices = @transform_4, window_bounds = array<i64: 1, 256>}, {transform_indices = @transform_5, window_bounds = array<i64: 1, 256>}, {transform_indices = @transform_6, window_bounds = array<i64: 2, 41, 256>}, {transform_indices = @transform_7, window_bounds = array<i64: 2, 41, 256>}]} {
    %c0 = arith.constant 0 : index
    %c0_0 = arith.constant 0 : index
    %0 = vector.load %arg3[%c0, %c0_0] : memref<41x41xf32, #tpu.memory_space<vmem>>, vector<41x41xf32>
    %1 = arith.truncf %0 : vector<41x41xf32> to vector<41x41xbf16>
    %c0_1 = arith.constant 0 : index
    %c0_2 = arith.constant 0 : index
    %2 = vector.load %arg4[%c0_1, %c0_2] : memref<41x1xf32, #tpu.memory_space<vmem>>, vector<41x1xf32>
    %c0_3 = arith.constant 0 : index
    %c0_4 = arith.constant 0 : index
    %3 = vector.load %arg5[%c0_3, %c0_4] : memref<1x256xf32, #tpu.memory_space<vmem>>, vector<1x256xf32>
    %c0_5 = arith.constant 0 : index
    %c0_6 = arith.constant 0 : index
    %4 = vector.load %arg6[%c0_5, %c0_6] : memref<1x256xf32, #tpu.memory_space<vmem>>, vector<1x256xf32>
    %c0_7 = arith.constant 0 : index
    %c0_8 = arith.constant 0 : index
    %c0_9 = arith.constant 0 : index
    %5 = vector.load %arg1[%c0_7, %c0_8, %c0_9] : memref<2x41x256xf32, #tpu.memory_space<vmem>>, vector<1x41x256xf32>
    %6 = vector.shape_cast %5 : vector<1x41x256xf32> to vector<41x256xf32>
    %c1 = arith.constant 1 : index
    %c0_10 = arith.constant 0 : index
    %c0_11 = arith.constant 0 : index
    %7 = vector.load %arg1[%c1, %c0_10, %c0_11] : memref<2x41x256xf32, #tpu.memory_space<vmem>>, vector<1x41x256xf32>
    %8 = vector.shape_cast %7 : vector<1x41x256xf32> to vector<41x256xf32>
    %9 = tpu.concatenate %6, %8 in 1 : vector<41x256xf32>, vector<41x256xf32> -> vector<41x512xf32>
    %10 = arith.truncf %9 : vector<41x512xf32> to vector<41x512xbf16>
    %cst = arith.constant dense<0.000000e+00> : vector<41x512xf32>
    %11 = tpu.matmul %1, %10, %cst {dimension_numbers = #tpu.dot_dimension_numbers<[1], [0], [0], [1], [0, 0, 1, 1], [], []>} : vector<41x41xbf16>, vector<41x512xbf16>, vector<41x512xf32> -> vector<41x512xf32>
    %12 = vector.broadcast %2 : vector<41x1xf32> to vector<41x512xf32>
    %13 = arith.addf %11, %12 : vector<41x512xf32>
    %cst_12 = arith.constant 0.000000e+00 : f32
    %14 = vector.broadcast %cst_12 : f32 to vector<41x512xf32>
    %15 = arith.maximumf %13, %14 : vector<41x512xf32>
    %16 = vector.extract_strided_slice %15 {offsets = [0, 0], sizes = [41, 256], strides = [1, 1]} : vector<41x512xf32> to vector<41x256xf32>
    %17 = vector.extract_strided_slice %15 {offsets = [0, 256], sizes = [41, 256], strides = [1, 1]} : vector<41x512xf32> to vector<41x256xf32>
    %cst_13 = arith.constant dense<0.000000e+00> : vector<256xf32>
    %18 = vector.multi_reduction <add>, %16, %cst_13 [0] : vector<41x256xf32> to vector<256xf32>
    %19 = vector.shape_cast %18 : vector<256xf32> to vector<1x256xf32>
    %20 = arith.mulf %16, %16 : vector<41x256xf32>
    %cst_14 = arith.constant dense<0.000000e+00> : vector<256xf32>
    %21 = vector.multi_reduction <add>, %20, %cst_14 [0] : vector<41x256xf32> to vector<256xf32>
    %22 = vector.shape_cast %21 : vector<256xf32> to vector<1x256xf32>
    %cst_15 = arith.constant dense<0.000000e+00> : vector<256xf32>
    %23 = vector.multi_reduction <add>, %17, %cst_15 [0] : vector<41x256xf32> to vector<256xf32>
    %24 = vector.shape_cast %23 : vector<256xf32> to vector<1x256xf32>
    %25 = arith.addf %19, %24 : vector<1x256xf32>
    %26 = arith.mulf %17, %17 : vector<41x256xf32>
    %cst_16 = arith.constant dense<0.000000e+00> : vector<256xf32>
    %27 = vector.multi_reduction <add>, %26, %cst_16 [0] : vector<41x256xf32> to vector<256xf32>
    %28 = vector.shape_cast %27 : vector<256xf32> to vector<1x256xf32>
    %29 = arith.addf %22, %28 : vector<1x256xf32>
    %cst_17 = arith.constant 0.0121951215 : f32
    %30 = vector.broadcast %cst_17 : f32 to vector<1x256xf32>
    %31 = arith.mulf %25, %30 : vector<1x256xf32>
    %cst_18 = arith.constant 0.0121951215 : f32
    %32 = vector.broadcast %cst_18 : f32 to vector<1x256xf32>
    %33 = arith.mulf %29, %32 : vector<1x256xf32>
    %34 = arith.mulf %31, %31 : vector<1x256xf32>
    %35 = arith.subf %33, %34 : vector<1x256xf32>
    %cst_19 = arith.constant 0.000000e+00 : f32
    %36 = vector.broadcast %cst_19 : f32 to vector<1x256xf32>
    %37 = arith.maximumf %35, %36 : vector<1x256xf32>
    %cst_20 = arith.constant 9.99999974E-6 : f32
    %38 = vector.broadcast %cst_20 : f32 to vector<1x256xf32>
    %39 = arith.addf %37, %38 : vector<1x256xf32>
    %40 = math.rsqrt %39 : vector<1x256xf32>
    %41 = arith.mulf %3, %40 : vector<1x256xf32>
    %42 = arith.mulf %31, %41 : vector<1x256xf32>
    %43 = arith.subf %4, %42 : vector<1x256xf32>
    %44 = vector.broadcast %41 : vector<1x256xf32> to vector<41x256xf32>
    %45 = arith.mulf %16, %44 : vector<41x256xf32>
    %46 = vector.broadcast %43 : vector<1x256xf32> to vector<41x256xf32>
    %47 = arith.addf %45, %46 : vector<41x256xf32>
    %48 = vector.broadcast %41 : vector<1x256xf32> to vector<41x256xf32>
    %49 = arith.mulf %17, %48 : vector<41x256xf32>
    %50 = vector.broadcast %43 : vector<1x256xf32> to vector<41x256xf32>
    %51 = arith.addf %49, %50 : vector<41x256xf32>
    %52 = arith.maximumf %47, %51 : vector<41x256xf32>
    %53 = arith.subf %47, %52 : vector<41x256xf32>
    %54 = math.exp %53 : vector<41x256xf32>
    %55 = arith.subf %51, %52 : vector<41x256xf32>
    %56 = math.exp %55 : vector<41x256xf32>
    %57 = arith.addf %54, %56 : vector<41x256xf32>
    %58 = tpu.reciprocal %57 {approx = true} : vector<41x256xf32> -> vector<41x256xf32>
    %59 = arith.mulf %54, %58 : vector<41x256xf32>
    %60 = arith.mulf %59, %47 : vector<41x256xf32>
    %61 = math.tanh %60 : vector<41x256xf32>
    %62 = arith.mulf %56, %58 : vector<41x256xf32>
    %63 = arith.mulf %62, %51 : vector<41x256xf32>
    %64 = math.tanh %63 : vector<41x256xf32>
    %c0_21 = arith.constant 0 : index
    %c0_22 = arith.constant 0 : index
    %c0_23 = arith.constant 0 : index
    %65 = vector.load %arg2[%c0_21, %c0_22, %c0_23] : memref<2x41x256xf32, #tpu.memory_space<vmem>>, vector<1x41x256xf32>
    %66 = vector.shape_cast %65 : vector<1x41x256xf32> to vector<41x256xf32>
    %cst_24 = arith.constant -1.000000e+00 : f32
    %67 = vector.broadcast %cst_24 : f32 to vector<41x256xf32>
    %68 = arith.mulf %67, %61 : vector<41x256xf32>
    %69 = arith.addf %66, %68 : vector<41x256xf32>
    %c0_25 = arith.constant 0 : index
    %c0_26 = arith.constant 0 : index
    %c0_27 = arith.constant 0 : index
    %70 = vector.load %arg7[%c0_25, %c0_26, %c0_27] : memref<2x41x256xf32, #tpu.memory_space<vmem>>, vector<1x41x256xf32>
    %71 = vector.shape_cast %70 : vector<1x41x256xf32> to vector<41x256xf32>
    %72 = vector.shape_cast %69 : vector<41x256xf32> to vector<1x41x256xf32>
    tpu.vector_store %arg7[%c0_25, %c0_26, %c0_27], %72 {strides = array<i32>} : memref<2x41x256xf32, #tpu.memory_space<vmem>>, vector<1x41x256xf32>,
    %c1_28 = arith.constant 1 : index
    %c0_29 = arith.constant 0 : index
    %c0_30 = arith.constant 0 : index
    %73 = vector.load %arg2[%c1_28, %c0_29, %c0_30] : memref<2x41x256xf32, #tpu.memory_space<vmem>>, vector<1x41x256xf32>
    %74 = vector.shape_cast %73 : vector<1x41x256xf32> to vector<41x256xf32>
    %cst_31 = arith.constant -1.000000e+00 : f32
    %75 = vector.broadcast %cst_31 : f32 to vector<41x256xf32>
    %76 = arith.mulf %75, %64 : vector<41x256xf32>
    %77 = arith.addf %74, %76 : vector<41x256xf32>
    %c1_32 = arith.constant 1 : index
    %c0_33 = arith.constant 0 : index
    %c0_34 = arith.constant 0 : index
    %78 = vector.load %arg7[%c1_32, %c0_33, %c0_34] : memref<2x41x256xf32, #tpu.memory_space<vmem>>, vector<1x41x256xf32>
    %79 = vector.shape_cast %78 : vector<1x41x256xf32> to vector<41x256xf32>
    %80 = vector.shape_cast %77 : vector<41x256xf32> to vector<1x41x256xf32>
    tpu.vector_store %arg7[%c1_32, %c0_33, %c0_34], %80 {strides = array<i32>} : memref<2x41x256xf32, #tpu.memory_space<vmem>>, vector<1x41x256xf32>,
    %81 = tpu.concatenate %69, %77 in 1 : vector<41x256xf32>, vector<41x256xf32> -> vector<41x512xf32>
    %82 = arith.truncf %81 : vector<41x512xf32> to vector<41x512xbf16>
    %cst_35 = arith.constant dense<0.000000e+00> : vector<41x512xf32>
    %83 = tpu.matmul %1, %82, %cst_35 {dimension_numbers = #tpu.dot_dimension_numbers<[1], [0], [0], [1], [0, 0, 1, 1], [], []>} : vector<41x41xbf16>, vector<41x512xbf16>, vector<41x512xf32> -> vector<41x512xf32>
    %84 = vector.broadcast %2 : vector<41x1xf32> to vector<41x512xf32>
    %85 = arith.addf %83, %84 : vector<41x512xf32>
    %cst_36 = arith.constant 0.000000e+00 : f32
    %86 = vector.broadcast %cst_36 : f32 to vector<41x512xf32>
    %87 = arith.maximumf %85, %86 : vector<41x512xf32>
    %88 = vector.extract_strided_slice %87 {offsets = [0, 0], sizes = [41, 256], strides = [1, 1]} : vector<41x512xf32> to vector<41x256xf32>
    %89 = vector.extract_strided_slice %87 {offsets = [0, 256], sizes = [41, 256], strides = [1, 1]} : vector<41x512xf32> to vector<41x256xf32>
    %cst_37 = arith.constant dense<0.000000e+00> : vector<256xf32>
    %90 = vector.multi_reduction <add>, %88, %cst_37 [0] : vector<41x256xf32> to vector<256xf32>
    %91 = vector.shape_cast %90 : vector<256xf32> to vector<1x256xf32>
    %92 = arith.mulf %88, %88 : vector<41x256xf32>
    %cst_38 = arith.constant dense<0.000000e+00> : vector<256xf32>
    %93 = vector.multi_reduction <add>, %92, %cst_38 [0] : vector<41x256xf32> to vector<256xf32>
    %94 = vector.shape_cast %93 : vector<256xf32> to vector<1x256xf32>
    %cst_39 = arith.constant dense<0.000000e+00> : vector<256xf32>
    %95 = vector.multi_reduction <add>, %89, %cst_39 [0] : vector<41x256xf32> to vector<256xf32>
    %96 = vector.shape_cast %95 : vector<256xf32> to vector<1x256xf32>
    %97 = arith.addf %91, %96 : vector<1x256xf32>
    %98 = arith.mulf %89, %89 : vector<41x256xf32>
    %cst_40 = arith.constant dense<0.000000e+00> : vector<256xf32>
    %99 = vector.multi_reduction <add>, %98, %cst_40 [0] : vector<41x256xf32> to vector<256xf32>
    %100 = vector.shape_cast %99 : vector<256xf32> to vector<1x256xf32>
    %101 = arith.addf %94, %100 : vector<1x256xf32>
    %cst_41 = arith.constant 0.0121951215 : f32
    %102 = vector.broadcast %cst_41 : f32 to vector<1x256xf32>
    %103 = arith.mulf %97, %102 : vector<1x256xf32>
    %cst_42 = arith.constant 0.0121951215 : f32
    %104 = vector.broadcast %cst_42 : f32 to vector<1x256xf32>
    %105 = arith.mulf %101, %104 : vector<1x256xf32>
    %106 = arith.mulf %103, %103 : vector<1x256xf32>
    %107 = arith.subf %105, %106 : vector<1x256xf32>
    %cst_43 = arith.constant 0.000000e+00 : f32
    %108 = vector.broadcast %cst_43 : f32 to vector<1x256xf32>
    %109 = arith.maximumf %107, %108 : vector<1x256xf32>
    %cst_44 = arith.constant 9.99999974E-6 : f32
    %110 = vector.broadcast %cst_44 : f32 to vector<1x256xf32>
    %111 = arith.addf %109, %110 : vector<1x256xf32>
    %112 = math.rsqrt %111 : vector<1x256xf32>
    %113 = arith.mulf %3, %112 : vector<1x256xf32>
    %114 = arith.mulf %103, %113 : vector<1x256xf32>
    %115 = arith.subf %4, %114 : vector<1x256xf32>
    %116 = vector.broadcast %113 : vector<1x256xf32> to vector<41x256xf32>
    %117 = arith.mulf %88, %116 : vector<41x256xf32>
    %118 = vector.broadcast %115 : vector<1x256xf32> to vector<41x256xf32>
    %119 = arith.addf %117, %118 : vector<41x256xf32>
    %120 = vector.broadcast %113 : vector<1x256xf32> to vector<41x256xf32>
    %121 = arith.mulf %89, %120 : vector<41x256xf32>
    %122 = vector.broadcast %115 : vector<1x256xf32> to vector<41x256xf32>
    %123 = arith.addf %121, %122 : vector<41x256xf32>
    %124 = arith.maximumf %119, %123 : vector<41x256xf32>
    %125 = arith.subf %119, %124 : vector<41x256xf32>
    %126 = math.exp %125 : vector<41x256xf32>
    %127 = arith.subf %123, %124 : vector<41x256xf32>
    %128 = math.exp %127 : vector<41x256xf32>
    %129 = arith.addf %126, %128 : vector<41x256xf32>
    %130 = tpu.reciprocal %129 {approx = true} : vector<41x256xf32> -> vector<41x256xf32>
    %131 = arith.mulf %126, %130 : vector<41x256xf32>
    %132 = arith.mulf %131, %119 : vector<41x256xf32>
    %133 = math.tanh %132 : vector<41x256xf32>
    %134 = arith.mulf %128, %130 : vector<41x256xf32>
    %135 = arith.mulf %134, %123 : vector<41x256xf32>
    %136 = math.tanh %135 : vector<41x256xf32>
    %c0_45 = arith.constant 0 : index
    %c0_46 = arith.constant 0 : index
    %c0_47 = arith.constant 0 : index
    %137 = vector.load %arg1[%c0_45, %c0_46, %c0_47] : memref<2x41x256xf32, #tpu.memory_space<vmem>>, vector<1x41x256xf32>
    %138 = vector.shape_cast %137 : vector<1x41x256xf32> to vector<41x256xf32>
    %cst_48 = arith.constant -1.000000e+00 : f32
    %139 = vector.broadcast %cst_48 : f32 to vector<41x256xf32>
    %140 = arith.mulf %139, %133 : vector<41x256xf32>
    %141 = arith.addf %138, %140 : vector<41x256xf32>
    %c0_49 = arith.constant 0 : index
    %c0_50 = arith.constant 0 : index
    %c0_51 = arith.constant 0 : index
    %142 = vector.load %arg8[%c0_49, %c0_50, %c0_51] : memref<2x41x256xf32, #tpu.memory_space<vmem>>, vector<1x41x256xf32>
    %143 = vector.shape_cast %142 : vector<1x41x256xf32> to vector<41x256xf32>
    %144 = vector.shape_cast %141 : vector<41x256xf32> to vector<1x41x256xf32>
    tpu.vector_store %arg8[%c0_49, %c0_50, %c0_51], %144 {strides = array<i32>} : memref<2x41x256xf32, #tpu.memory_space<vmem>>, vector<1x41x256xf32>,
    %c1_52 = arith.constant 1 : index
    %c0_53 = arith.constant 0 : index
    %c0_54 = arith.constant 0 : index
    %145 = vector.load %arg1[%c1_52, %c0_53, %c0_54] : memref<2x41x256xf32, #tpu.memory_space<vmem>>, vector<1x41x256xf32>
    %146 = vector.shape_cast %145 : vector<1x41x256xf32> to vector<41x256xf32>
    %cst_55 = arith.constant -1.000000e+00 : f32
    %147 = vector.broadcast %cst_55 : f32 to vector<41x256xf32>
    %148 = arith.mulf %147, %136 : vector<41x256xf32>
    %149 = arith.addf %146, %148 : vector<41x256xf32>
    %c1_56 = arith.constant 1 : index
    %c0_57 = arith.constant 0 : index
    %c0_58 = arith.constant 0 : index
    %150 = vector.load %arg8[%c1_56, %c0_57, %c0_58] : memref<2x41x256xf32, #tpu.memory_space<vmem>>, vector<1x41x256xf32>
    %151 = vector.shape_cast %150 : vector<1x41x256xf32> to vector<41x256xf32>
    %152 = vector.shape_cast %149 : vector<41x256xf32> to vector<1x41x256xf32>
    tpu.vector_store %arg8[%c1_56, %c0_57, %c0_58], %152 {strides = array<i32>} : memref<2x41x256xf32, #tpu.memory_space<vmem>>, vector<1x41x256xf32>,
    return
  }
  func.func @transform_0(%arg0: i32) -> (i32, i32, i32) {
    %c0_i32 = arith.constant 0 : i32
    %c0_i32_0 = arith.constant 0 : i32
    %c0_i32_1 = arith.constant 0 : i32
    return %c0_i32, %c0_i32_0, %arg0 : i32, i32, i32
  }
  func.func @transform_1(%arg0: i32) -> (i32, i32, i32) {
    %c0_i32 = arith.constant 0 : i32
    %c0_i32_0 = arith.constant 0 : i32
    %c0_i32_1 = arith.constant 0 : i32
    return %c0_i32, %c0_i32_0, %arg0 : i32, i32, i32
  }
  func.func @transform_2(%arg0: i32) -> (i32, i32) {
    %c0_i32 = arith.constant 0 : i32
    %c0_i32_0 = arith.constant 0 : i32
    %c0_i32_1 = arith.constant 0 : i32
    return %c0_i32, %c0_i32_0 : i32, i32
  }
  func.func @transform_3(%arg0: i32) -> (i32, i32) {
    %c0_i32 = arith.constant 0 : i32
    %c0_i32_0 = arith.constant 0 : i32
    %c0_i32_1 = arith.constant 0 : i32
    return %c0_i32, %c0_i32_0 : i32, i32
  }
  func.func @transform_4(%arg0: i32) -> (i32, i32) {
    %c0_i32 = arith.constant 0 : i32
    %c0_i32_0 = arith.constant 0 : i32
    return %c0_i32, %arg0 : i32, i32
  }
  func.func @transform_5(%arg0: i32) -> (i32, i32) {
    %c0_i32 = arith.constant 0 : i32
    %c0_i32_0 = arith.constant 0 : i32
    return %c0_i32, %arg0 : i32, i32
  }
  func.func @transform_6(%arg0: i32) -> (i32, i32, i32) {
    %c0_i32 = arith.constant 0 : i32
    %c0_i32_0 = arith.constant 0 : i32
    %c0_i32_1 = arith.constant 0 : i32
    return %c0_i32, %c0_i32_0, %arg0 : i32, i32, i32
  }
  func.func @transform_7(%arg0: i32) -> (i32, i32, i32) {
    %c0_i32 = arith.constant 0 : i32
    %c0_i32_0 = arith.constant 0 : i32
    %c0_i32_1 = arith.constant 0 : i32
    return %c0_i32, %c0_i32_0, %arg0 : i32, i32, i32
  }
}

</mosaic_0001>

<bundles_post_ra>
// kernel: tpu_custom_call.1
= control target key start
LH: loop header
LB: loop body
LE: loop exit
PB: predicated region body
PF: predicated region fallthrough
CT: control target
= control target key end

     0   :  { %vm120_vm0 = vcmask 1043456   ;;  %vm121_vm1 = vcmask 1044480   ;;  %v1847_v2 = vmov 65535   ;;  %v3212_v5 = vmov 0   ;;  %s3204_s0 = inlined_call_operand.vmem [shape: f32[2,41,256], index: 0, kind: input, shape index: {}]   ;;  %s3205_s2 = inlined_call_operand.vmem [shape: f32[41,41], index: 2, kind: input, shape index: {}]   ;;  %s3206_s3 = inlined_call_operand.vmem [shape: f32[41,1], index: 3, kind: input, shape index: {}]   ;;  %s3207_s4 = inlined_call_operand.vmem [shape: f32[1,256], index: 4, kind: input, shape index: {}]   ;;  %s3208_s5 = inlined_call_operand.vmem [shape: f32[1,256], index: 5, kind: input, shape index: {}]   ;;  %s3209_s1 = inlined_call_operand.vmem [shape: f32[2,41,256], index: 1, kind: input, shape index: {}]   ;;  %s3210_s6 = inlined_call_operand.vmem [shape: f32[2,41,256], index: 6, kind: output, shape index: {0}]   ;;  %s3211_s7 = inlined_call_operand.vmem [shape: f32[2,41,256], index: 7, kind: output, shape index: {1}]  }
   0x1   :  { %v52_v0 = vld [vmem:[%s3204_s0 + $0x48] sm:$0xff]  ;;  %v54_v1 = vld [vmem:[%s3204_s0 + $0x58] sm:$0x1]  ;;  %v122_v3 = vsel %vm120_vm0, 4294967295, %v1847_v2  ;;  %168 = vmatprep.mubr.bf16.mxu0 %v3212_v5  ;;  %231 = vmatprep.mubr.bf16.mxu1 %v3212_v5  ;;  %v51_v9 = vld [vmem:[%s3204_s0 + $0x40] sm:$0xff]  ;;  %vm110_vm2 = vcmask 334848  }
   0x2   :  { %v1529_v4 = vld [vmem:[%s3204_s0 + $0xa8] sm:$0xff]  ;;  %v77_v6 = vpack.c.bf16 %v54_v1, %v52_v0  ;;  %v1901_v7 = vsel %vm121_vm1, %v122_v3, 0  ;;  %v1531_v8 = vld [vmem:[%s3204_s0 + $0xb8] sm:$0x1]  ;;  %v53_v10 = vld [vmem:[%s3204_s0 + $0x50] sm:$0x1]  ;;  %1595 = vset.pattern.permute.xlu0 %v3212_v5  ;;  %1596 = vset.pattern.permute.xlu1 %v3212_v5 }
   0x3   :  { %v79_v11 = vpack.c.bf16 %v1531_v8, %v1529_v4  ;;  %v76_v12 = vpack.c.bf16 %v53_v10, %v51_v9  ;;  %v1528_v13 = vld [vmem:[%s3204_s0 + $0xa0] sm:$0xff]  ;;  %v1530_v14 = vld [vmem:[%s3204_s0 + $0xb0] sm:$0x1]  ;;  %v48_v15 = vld [vmem:[%s3204_s0 + $0x28] sm:$0xff]  ;;  %vm290_vm3 = vcmask 1040384  }
   0x4   :  { %v128_v16 = vand.u32 %v1901_v7, %v77_v6  ;;  %v78_v17 = vpack.c.bf16 %v1530_v14, %v1528_v13  ;;  %v50_v18 = vld [vmem:[%s3204_s0 + $0x38] sm:$0xff]  ;;  %v1525_v19 = vld [vmem:[%s3204_s0 + $0x88] sm:$0xff]  ;;  %v47_v25 = vld [vmem:[%s3204_s0 + $0x20] sm:$0xff] }
   0x5   :  { %v1527_v20 = vld [vmem:[%s3204_s0 + $0x98] sm:$0xff]  ;;  %v134_v21 = vand.u32 %v1901_v7, %v79_v11  ;;  %v125_v22 = vand.u32 %v1901_v7, %v76_v12  ;;  %v73_v23 = vpack.c.bf16 %v50_v18, %v48_v15  ;;  %v49_v26 = vld [vmem:[%s3204_s0 + $0x30] sm:$0xff]  ;;  %v1524_v27 = vld [vmem:[%s3204_s0 + $0x80] sm:$0xff] }
   0x6   :  { %v75_v24 = vpack.c.bf16 %v1527_v20, %v1525_v19  ;;  %146 = vmatprep.subr.bf16.mxu0 %v128_v16  ;;  %v131_v28 = vand.u32 %v1901_v7, %v78_v17  ;;  %v1526_v29 = vld [vmem:[%s3204_s0 + $0x90] sm:$0xff]  ;;  %v44_v30 = vld [vmem:[%s3204_s0 + $0x8] sm:$0xff]  ;;  %v46_v31 = vld [vmem:[%s3204_s0 + $0x18] sm:$0xff]  ;;  %v72_v32 = vpack.c.bf16 %v49_v26, %v47_v25 }
   0x7   :  { %209 = vmatprep.subr.bf16.mxu1 %v134_v21  ;;  %147 = vmatpush1.bf16.msra.mxu0 %v125_v22  ;;  %v1521_v33 = vld [vmem:[%s3204_s0 + $0x68] sm:$0xff]  ;;  %v1523_v34 = vld [vmem:[%s3204_s0 + $0x78] sm:$0xff]  ;;  %v74_v35 = vpack.c.bf16 %v1526_v29, %v1524_v27  ;;  %v69_v36 = vpack.c.bf16 %v46_v31, %v44_v30  ;;  %v43_v37 = vld [vmem:[%s3204_s0] sm:$0xff] }
   0x8   :  { %210 = vmatpush1.bf16.msra.mxu1 %v131_v28  ;;  %148 = vmatprep.subr.bf16.mxu0 %v73_v23  ;;  %v45_v38 = vld [vmem:[%s3204_s0 + $0x10] sm:$0xff]  ;;  %v71_v39 = vpack.c.bf16 %v1523_v34, %v1521_v33  ;;  %v1520_v40 = vld [vmem:[%s3204_s0 + $0x60] sm:$0xff]  ;;  %v27_v44 = vld [vmem:[%s3205_s2 + $0x8] sm:$0xff] }
   0x9   :  { %211 = vmatprep.subr.bf16.mxu1 %v75_v24  ;;  %v1522_v41 = vld [vmem:[%s3204_s0 + $0x70] sm:$0xff]  ;;  %v26_v42 = vld [vmem:[%s3205_s2] sm:$0xff]  ;;  %v68_v43 = vpack.c.bf16 %v45_v38, %v43_v37  ;;  %v36_v49 = vld [vmem:[%s3206_s3 + $0x8] sm:$0xff] }
   0xa   :  { %v35_v45 = vld [vmem:[%s3206_s3] sm:$0xff]  ;;  %v37_v46 = vld [vmem:[%s3206_s3 + $0x10] sm:$0xff]  ;;  %v70_v47 = vpack.c.bf16 %v1522_v41, %v1520_v40  ;;  %v1984_v48 = vpack.c.bf16 %v27_v44, %v26_v42  ;;  %v38_v50 = vld [vmem:[%s3206_s3 + $0x18] sm:$0xff] }
   0xb   :  { %149 = vmatpush1.bf16.msra.mxu0 %v72_v32  ;;  %82 = vperm.xlu0 %1595, %v35_v45   ;;  %v39_v51 = vld [vmem:[%s3206_s3 + $0x20] sm:$0xff]  ;;  %v28_v52 = vld [vmem:[%s3205_s2 + $0x10] sm:$0xff]  ;;  %v29_v53 = vld [vmem:[%s3205_s2 + $0x18] sm:$0xff] }
   0xc   :  { %212 = vmatpush1.bf16.msra.mxu1 %v74_v35  ;;  %150 = vmatprep.subr.bf16.mxu0 %v69_v36  ;;  %v40_v54 = vld [vmem:[%s3206_s3 + $0x28] sm:$0x1]  ;;  %v2010_v55 = vpack.c.bf16 %v29_v53, %v28_v52  ;;  %v30_v56 = vld [vmem:[%s3205_s2 + $0x20] sm:$0xff] }
   0xd   :  { %213 = vmatprep.subr.bf16.mxu1 %v71_v39  ;;  %92 = vperm.xlu1 %1596, %v37_v46   ;;  %v31_v57 = vld [vmem:[%s3205_s2 + $0x28] sm:$0x1] }
   0xe   :  { %v2024_v58 = vpack.c.bf16 %v31_v57, %v30_v56 }
   0xf   :  { %151 = vmatpush1.bf16.msra.mxu0 %v68_v43  ;;  %87 = vperm.xlu0 %1595, %v36_v49  }
  0x10   :  { %214 = vmatpush1.bf16.msra.mxu1 %v70_v47 }
  0x11   :  { %97 = vperm.xlu1 %1596, %v38_v50  }
  0x12   :  { %1532 = vmatmul.mubr.msk.bf16.vlgmr.msra.gmra.mxu0 %vm110_vm2, %v1984_v48 }
  0x13   :  { %1535 = vmatmul.mubr.msk.bf16.vlgmr.msra.gmra.mxu1 %vm110_vm2, %v1984_v48  ;;  %178 = vmatprep.mubr.bf16.mxu0 %v3212_v5 }
  0x14   :  { %241 = vmatprep.mubr.bf16.mxu1 %v3212_v5  ;;  %102 = vperm.xlu0 %1595, %v39_v51  }
  0x15   :  { %107 = vperm.xlu1 %1596, %v40_v54  }
  0x1a   :  { %1533 = vmatmul.mubr.msk.bf16.gmra.mxu0 %vm110_vm2, %v2010_v55 }
  0x1b   :  { %1536 = vmatmul.mubr.msk.bf16.gmra.mxu1 %vm110_vm2, %v2010_v55  ;;  %188 = vmatprep.mubr.bf16.mxu0 %v3212_v5 }
  0x1c   :  { %251 = vmatprep.mubr.bf16.mxu1 %v3212_v5 }
  0x22   :  { %1534 = vmatmul.mubr.msk.bf16.gmra.mxu0 %vm110_vm2, %v2024_v58 }
  0x23   :  { %1537 = vmatmul.mubr.msk.bf16.gmra.mxu1 %vm110_vm2, %v2024_v58  ;;  %869 = vmatprep.mubr.bf16.mxu0 %v3212_v5 }
  0x24   :  { %932 = vmatprep.mubr.bf16.mxu1 %v3212_v5 }
  0x86   :  { %v2032_v59 = vpop.permute.xlu0 %82 }
  0x88   :  { %v2057_v21 = vpop.permute.xlu1 %92 }
  0x89   :  { %3224 = vst [vmem:[#allocation2_spill] sm:$0xff] %v2057_v21 }
  0x8a   :  { %v2036_v1 = vpop.permute.xlu0 %87 }
  0x8c   :  { %v2096_v53 = vpop.permute.xlu1 %97 }
  0x8d   :  { %3225 = vst [vmem:[#allocation3_spill] sm:$0xff] %v2096_v53 }
  0xd2   :  { %v170_v60 = vpop.f32.mrf.mxu0 }
  0xd3   :  { %v171_v61 = vadd.f32 %v170_v60, %v2032_v59  ;;  %v233_v62 = vpop.f32.mrf.mxu1 }
  0xd4   :  { %v234_v63 = vadd.f32 %v233_v62, %v2032_v59  ;;  %v172_v0 = vpop.f32.mrf.mxu0 }
  0xd5   :  { %v173_v2 = vadd.f32 %v172_v0, %v2032_v59  ;;  %v235_v3 = vpop.f32.mrf.mxu1  ;;  %v2039_v4 = vmax.f32 %v171_v61, 0.0 }
  0xd6   :  { %v236_v6 = vadd.f32 %v235_v3, %v2032_v59  ;;  %v174_v8 = vpop.f32.mrf.mxu0  ;;  %v2042_v9 = vmax.f32 %v234_v63, 0.0 }
  0xd7   :  { %v175_v10 = vadd.f32 %v174_v8, %v2036_v1  ;;  %v237_v11 = vpop.f32.mrf.mxu1  ;;  %v2045_v12 = vmax.f32 %v173_v2, 0.0  ;;  %v311_v19 = vmul.f32 %v2039_v4, %v2039_v4 }
  0xd8   :  { %v238_v13 = vadd.f32 %v237_v11, %v2036_v1  ;;  %v176_v14 = vpop.f32.mrf.mxu0  ;;  %v2048_v15 = vmax.f32 %v236_v6, 0.0  ;;  %v373_v24 = vmul.f32 %v2042_v9, %v2042_v9 }
  0xd9   :  { %v2050_v16 = vmax.f32 %v175_v10, 0.0  ;;  %v177_v17 = vadd.f32 %v176_v14, %v2036_v1  ;;  %v239_v18 = vpop.f32.mrf.mxu1  ;;  %v312_v29 = vmul.f32 %v2045_v12, %v2045_v12 }
  0xda   :  { %v2055_v20 = vmax.f32 %v238_v13, 0.0  ;;  %v240_v22 = vadd.f32 %v239_v18, %v2036_v1  ;;  %v180_v23 = vpop.f32.mrf.mxu0  ;;  %v374_v34 = vmul.f32 %v2048_v15, %v2048_v15 }
  0xdb   :  { %v313_v25 = vmul.f32 %v2050_v16, %v2050_v16  ;;  %v2064_v26 = vmax.f32 %v177_v17, 0.0  ;;  %v181_v27 = vadd.f32 %v180_v23, %v2057_v21  ;;  %v243_v28 = vpop.f32.mrf.mxu1  ;;  %v286_v35 = vadd.f32 %v2050_v16, %v2039_v4 }
  0xdc   :  { %v375_v30 = vmul.f32 %v2055_v20, %v2055_v20  ;;  %v2071_v31 = vmax.f32 %v240_v22, 0.0  ;;  %v244_v32 = vadd.f32 %v243_v28, %v2057_v21  ;;  %v182_v33 = vpop.f32.mrf.mxu0  ;;  %v347_v40 = vadd.f32 %v2055_v20, %v2042_v9 }
  0xdd   :  { %v314_v36 = vmul.f32 %v2064_v26, %v2064_v26  ;;  %v2080_v37 = vmax.f32 %v181_v27, 0.0  ;;  %v245_v38 = vpop.f32.mrf.mxu1  ;;  %v323_v39 = vadd.f32 %v313_v25, %v311_v19  ;;  %v299_v45 = vadd.f32 %v2064_v26, %v2045_v12 }
  0xde   :  { %v376_v41 = vmul.f32 %v2071_v31, %v2071_v31  ;;  %v2086_v42 = vmax.f32 %v244_v32, 0.0  ;;  %v184_v43 = vpop.f32.mrf.mxu0  ;;  %v385_v44 = vadd.f32 %v375_v30, %v373_v24  ;;  %v359_v46 = vadd.f32 %v2071_v31, %v2048_v15 }
  0xdf   :  { %v183_v47 = vadd.f32 %v182_v33, %v2057_v21  ;;  %v247_v49 = vpop.f32.mrf.mxu1  ;;  %v335_v50 = vadd.f32 %v314_v36, %v312_v29  ;;  %v287_v51 = vadd.f32 %v286_v35, %v2080_v37  ;;  %v315_v52 = vmul.f32 %v2080_v37, %v2080_v37  ;;  %v2126_v33 = vpop.permute.xlu0 %102 }
  0xe0   :  { %v246_v54 = vadd.f32 %v245_v38, %v2057_v21  ;;  %v186_v56 = vpop.f32.mrf.mxu0  ;;  %v377_v57 = vmul.f32 %v2086_v42, %v2086_v42  ;;  %v185_v61 = vadd.f32 %v184_v43, %v2096_v53  ;;  %v248_v62 = vadd.f32 %v247_v49, %v2096_v53  ;;  %3226 = vst [vmem:[#allocation4_spill] sm:$0xff] %v2126_v33 }
  0xe1   :  { %v2101_v60 = vmax.f32 %v183_v47, 0.0  ;;  %v249_v63 = vpop.f32.mrf.mxu1  ;;  %v397_v0 = vadd.f32 %v376_v41, %v374_v34  ;;  %v187_v3 = vadd.f32 %v186_v56, %v2096_v53  ;;  %v348_v10 = vadd.f32 %v347_v40, %v2086_v42 }
  0xe2   :  { %v2105_v2 = vmax.f32 %v246_v54, 0.0  ;;  %v250_v6 = vadd.f32 %v249_v63, %v2096_v53  ;;  %v190_v8 = vpop.f32.mrf.mxu0  ;;  %v2112_v13 = vmax.f32 %v185_v61, 0.0  ;;  %v2114_v14 = vmax.f32 %v248_v62, 0.0 }
  0xe3   :  { %v316_v11 = vmul.f32 %v2101_v60, %v2101_v60  ;;  %v253_v17 = vpop.f32.mrf.mxu1  ;;  %v324_v18 = vadd.f32 %v323_v39, %v315_v52  ;;  %v2118_v22 = vmax.f32 %v187_v3, 0.0  ;;  %v386_v25 = vadd.f32 %v385_v44, %v377_v57 }
  0xe4   :  { %v378_v19 = vmul.f32 %v2105_v2, %v2105_v2  ;;  %v2120_v23 = vmax.f32 %v250_v6, 0.0  ;;  %v192_v24 = vpop.f32.mrf.mxu0  ;;  %v300_v27 = vadd.f32 %v299_v45, %v2101_v60  ;;  %v360_v28 = vadd.f32 %v359_v46, %v2105_v2  ;;  %v2136_v46 = vpop.permute.xlu1 %107 }
  0xe5   :  { %v317_v29 = vmul.f32 %v2112_v13, %v2112_v13  ;;  %v255_v30 = vpop.f32.mrf.mxu1  ;;  %v336_v32 = vadd.f32 %v335_v50, %v316_v11  ;;  %v288_v34 = vadd.f32 %v287_v51, %v2112_v13  ;;  %v349_v35 = vadd.f32 %v348_v10, %v2114_v14  ;;  %3227 = vst [vmem:[#allocation5_spill] sm:$0xff] %v2136_v46 }
  0xe6   :  { %v379_v36 = vmul.f32 %v2114_v14, %v2114_v14  ;;  %v194_v38 = vpop.f32.mrf.mxu0  ;;  %v398_v39 = vadd.f32 %v397_v0, %v378_v19  ;;  %v301_v40 = vadd.f32 %v300_v27, %v2118_v22  ;;  %v318_v41 = vmul.f32 %v2118_v22, %v2118_v22 }
  0xe7   :  { %v191_v43 = vadd.f32 %v190_v8, %v2126_v33  ;;  %v257_v44 = vpop.f32.mrf.mxu1  ;;  %v325_v45 = vadd.f32 %v324_v18, %v317_v29  ;;  %v361_v47 = vadd.f32 %v360_v28, %v2120_v23  ;;  %v254_v49 = vadd.f32 %v253_v17, %v2126_v33 }
  0xe8   :  { %v193_v50 = vadd.f32 %v192_v24, %v2126_v33  ;;  %v196_v51 = vpop.f32.mrf.mxu0  ;;  %v380_v52 = vmul.f32 %v2120_v23, %v2120_v23  ;;  %v256_v56 = vadd.f32 %v255_v30, %v2126_v33  ;;  %v195_v57 = vadd.f32 %v194_v38, %v2136_v46 }
  0xe9   :  { %v2143_v54 = vmax.f32 %v191_v43, 0.0  ;;  %v387_v61 = vadd.f32 %v386_v25, %v379_v36  ;;  %v2147_v62 = vmax.f32 %v254_v49, 0.0  ;;  %v258_v0 = vadd.f32 %v257_v44, %v2136_v46  ;;  %v259_v24 = vpop.f32.mrf.mxu1 }
  0xea   :  { %v2149_v63 = vmax.f32 %v193_v50, 0.0  ;;  %v2154_v6 = vmax.f32 %v256_v56, 0.0  ;;  %v2156_v8 = vmax.f32 %v195_v57, 0.0  ;;  %v197_v10 = vadd.f32 %v196_v51, %v2136_v46 }
  0xeb   :  { %v319_v3 = vmul.f32 %v2143_v54, %v2143_v54  ;;  %v337_v11 = vadd.f32 %v336_v32, %v318_v41  ;;  %v289_v17 = vadd.f32 %v288_v34, %v2143_v54  ;;  %v381_v18 = vmul.f32 %v2147_v62, %v2147_v62 }
  0xec   :  { %v320_v19 = vmul.f32 %v2149_v63, %v2149_v63  ;;  %v399_v25 = vadd.f32 %v398_v39, %v380_v52  ;;  %v350_v27 = vadd.f32 %v349_v35, %v2147_v62  ;;  %v302_v28 = vadd.f32 %v301_v40, %v2149_v63 }
  0xed   :  { %v291_v29 = vsel %vm290_vm3, %v2156_v8, 0.0  ;;  %v326_v30 = vadd.f32 %v325_v45, %v319_v3  ;;  %v362_v32 = vadd.f32 %v361_v47, %v2154_v6  ;;  %v321_v34 = vmul.f32 %v2156_v8, %v2156_v8 }
  0xee   :  { %v292_v36 = vadd.f32 %v291_v29, %v289_v17  ;;  %v382_v38 = vmul.f32 %v2154_v6, %v2154_v6  ;;  %v2173_v41 = vmax.f32 %v258_v0, 0.0  ;;  %v2175_v39 = vmax.f32 %v197_v10, 0.0 }
  0xef   :  { %v260_v35 = vadd.f32 %v259_v24, %v2136_v46  ;;  %v388_v40 = vadd.f32 %v387_v61, %v381_v18  ;;  %v338_v43 = vadd.f32 %v337_v11, %v320_v19  ;;  %v327_v45 = vsel %vm290_vm3, %v321_v34, 0.0 }
  0xf0   :  { %v293_v44 = vrot.slane %v292_v36, 4  ;;  %v328_v49 = vadd.f32 %v327_v45, %v326_v30  ;;  %v351_v47 = vsel %vm290_vm3, %v2173_v41, 0.0  ;;  %v383_v50 = vmul.f32 %v2173_v41, %v2173_v41 }
  0xf1   :  { %v303_v51 = vsel %vm290_vm3, %v2175_v39, 0.0  ;;  %v352_v56 = vadd.f32 %v351_v47, %v350_v27  ;;  %v322_v61 = vmul.f32 %v2175_v39, %v2175_v39  ;;  %v400_v0 = vadd.f32 %v399_v25, %v382_v38 }
  0xf2   :  { %v294_v52 = vadd.f32 %v293_v44, %v292_v36  ;;  %v304_v57 = vadd.f32 %v303_v51, %v302_v28  ;;  %v329_v3 = vrot.slane %v328_v49, 4  ;;  %v389_v10 = vsel %vm290_vm3, %v383_v50, 0.0 }
  0xf3   :  { %v2188_v11 = vmax.f32 %v260_v35, 0.0  ;;  %v353_v18 = vrot.slane %v352_v56, 4  ;;  %v390_v19 = vadd.f32 %v389_v10, %v388_v40  ;;  %v339_v30 = vsel %vm290_vm3, %v322_v61, 0.0 }
  0xf4   :  { %v295_v17 = vrot.slane %v294_v52, 2  ;;  %v305_v24 = vrot.slane %v304_v57, 4  ;;  %v330_v29 = vadd.f32 %v329_v3, %v328_v49  ;;  %v340_v35 = vadd.f32 %v339_v30, %v338_v43 }
  0xf5   :  { %v363_v27 = vsel %vm290_vm3, %v2188_v11, 0.0  ;;  %v384_v28 = vmul.f32 %v2188_v11, %v2188_v11  ;;  %v354_v25 = vadd.f32 %v353_v18, %v352_v56  ;;  %v391_v34 = vrot.slane %v390_v19, 4 }
  0xf6   :  { %v296_v36 = vadd.f32 %v295_v17, %v294_v52  ;;  %v306_v38 = vadd.f32 %v305_v24, %v304_v57  ;;  %v331_v44 = vrot.slane %v330_v29, 2  ;;  %v364_v45 = vadd.f32 %v363_v27, %v362_v32 }
  0xf7   :  { %v401_v47 = vsel %vm290_vm3, %v384_v28, 0.0  ;;  %v355_v50 = vrot.slane %v354_v25, 2  ;;  %v392_v49 = vadd.f32 %v391_v34, %v390_v19  ;;  %v341_v3 = vrot.slane %v340_v35, 4 }
  0xf8   :  { %v297_v40 = vrot.slane %v296_v36, 1  ;;  %v307_v51 = vrot.slane %v306_v38, 2  ;;  %v332_v61 = vadd.f32 %v331_v44, %v330_v29  ;;  %v365_v10 = vrot.slane %v364_v45, 4 }
  0xf9   :  { %v402_v5 = vadd.f32 %v401_v47, %v400_v0  ;;  %v356_v46 = vadd.f32 %v355_v50, %v354_v25  ;;  %v393_v33 = vrot.slane %v392_v49, 2  ;;  %v342_v56 = vadd.f32 %v341_v3, %v340_v35 }
  0xfa   :  { %v308_v53 = vadd.f32 %v307_v51, %v306_v38  ;;  %v333_v52 = vrot.slane %v332_v61, 1  ;;  %v366_v17 = vadd.f32 %v365_v10, %v364_v45  ;;  %v298_v18 = vadd.f32 %v297_v40, %v296_v36 }
  0xfb   :  { %v403_v57 = vrot.slane %v402_v5, 4  ;;  %v357_v43 = vrot.slane %v356_v46, 1  ;;  %v394_v32 = vadd.f32 %v393_v33, %v392_v49  ;;  %v343_v30 = vrot.slane %v342_v56, 2 }
  0xfc   :  { %v309_v24 = vrot.slane %v308_v53, 1  ;;  %v367_v27 = vrot.slane %v366_v17, 2  ;;  %v334_v19 = vadd.f32 %v333_v52, %v332_v61 }
  0xfd   :  { %v404_v28 = vadd.f32 %v403_v57, %v402_v5  ;;  %v358_v34 = vadd.f32 %v357_v43, %v356_v46  ;;  %v395_v29 = vrot.slane %v394_v32, 1  ;;  %v344_v44 = vadd.f32 %v343_v30, %v342_v56 }
  0xfe   :  { %v368_v21 = vadd.f32 %v367_v27, %v366_v17  ;;  %v310_v38 = vadd.f32 %v309_v24, %v308_v53  ;;  %v1849_v30 = vmov 1966171168  }
  0xff   :  { %v405_v0 = vrot.slane %v404_v28, 2  ;;  %v371_v25 = vadd.f32 %v358_v34, %v298_v18  ;;  %v396_v47 = vadd.f32 %v395_v29, %v394_v32  ;;  %v345_v50 = vrot.slane %v344_v44, 1 }
 0x100   :  { %v369_v35 = vrot.slane %v368_v21, 1  ;;  %v429_v27 = vunpack.c.l.s4 %v1849_v30 }
 0x101   :  { %v406_v45 = vadd.f32 %v405_v0, %v404_v28  ;;  %v409_v51 = vadd.f32 %v396_v47, %v334_v19  ;;  %v411_v36 = vmul.f32 0.0121951215, %v371_v25  ;;  %v346_v40 = vadd.f32 %v345_v50, %v344_v44  ;;  %v41_v47 = vld [vmem:[%s3207_s4] sm:$0x3] }
 0x102   :  { %v370_v33 = vadd.f32 %v369_v35, %v368_v21  ;;  %v431_v21 = vlaneseq  ;;  %v430_v28 = vunpack.c.0.s8 %v429_v27 }
 0x103   :  { %v407_v49 = vrot.slane %v406_v45, 1  ;;  %v413_v3 = vmul.f32 0.0121951215, %v409_v51  ;;  %v415_v10 = vmul.f32 %v411_v36, %v411_v36 }
 0x104   :  { %v372_v5 = vadd.f32 %v370_v33, %v310_v38  ;;  %v432_v19 = vshrl.u32 %v431_v21, 7 }
 0x105   :  { %v408_v61 = vadd.f32 %v407_v49, %v406_v45  ;;  %v417_v46 = vsub.f32 %v413_v3, %v415_v10 }
 0x106   :  { %v412_v56 = vmul.f32 0.0121951215, %v372_v5  ;;  %v2196_v29 = vsub.s32 %v430_v28, %v432_v19  ;;  %v2203_v50 = vsub.s32 0, %v432_v19  ;;  %v2205_v35 = vsub.s32 1, %v432_v19  ;;  %v42_v5 = vld [vmem:[%s3208_s5] sm:$0x3] }
 0x107   :  { %v410_v52 = vadd.f32 %v408_v61, %v346_v40  ;;  %v419_v17 = vmax.f32 %v417_v46, 0.0 }
 0x108   :  { %v416_v18 = vmul.f32 %v412_v56, %v412_v56  ;;  %3228 = vst [vmem:[#allocation6_spill] sm:$0xff] %v2205_v35 }
 0x109   :  { %v414_v57 = vmul.f32 0.0121951215, %v410_v52  ;;  %v421_v53 = vadd.f32 1e-05, %v419_v17 }
 0x10b   :  { %v418_v43 = vsub.f32 %v414_v57, %v416_v18  ;;  %1597 = vrsqrt.f32 %v421_v53 }
 0x10d   :  { %v420_v32 = vmax.f32 %v418_v43, 0.0 }
 0x10f   :  { %v422_v24 = vadd.f32 1e-05, %v420_v32 }
 0x111   :  { %1599 = vrsqrt.f32 %v422_v24 }
 0x118   :  { %v1598_v34 = vpop.eup %1597 }
 0x11e   :  { %v1600_v44 = vpop.eup %1599 }
 0x11f   :  { %v427_v0 = vcombine.low %v1598_v34, %v1600_v44 }
 0x121   :  { %v434_v25 = vrot.slane %v427_v0, %v2196_v29 }
 0x123   :  { %v441_v38 = vrot.slane %v434_v25, %v2196_v29 }
 0x125   :  { %v443_v45 = vmul.f32 %v441_v38, %v41_v47 }
 0x127   :  { %v2208_v51 = vrot.slane %v443_v45, %v2203_v50  ;;  %v452_v40 = vrot.slane %v443_v45, %v2205_v35 }
 0x129   :  { %v455_v33 = vmul.f32 %v2208_v51, %v411_v36  ;;  %v456_v49 = vmul.f32 %v452_v40, %v412_v56  ;;  %v487_v46 = vmul.f32 %v452_v40, %v2175_v39  ;;  %v522_v52 = vmul.f32 %v452_v40, %v2188_v11 }
 0x12a   :  { %v485_v17 = vmul.f32 %v452_v40, %v2149_v63  ;;  %v520_v57 = vmul.f32 %v452_v40, %v2154_v6  ;;  %v484_v36 = vmul.f32 %v2208_v51, %v2143_v54  ;;  %v486_v56 = vmul.f32 %v2208_v51, %v2156_v8 }
 0x12b   :  { %v459_v3 = vcombine.low %v455_v33, %v456_v49  ;;  %v519_v43 = vmul.f32 %v2208_v51, %v2147_v62  ;;  %v521_v53 = vmul.f32 %v2208_v51, %v2173_v41  ;;  %v481_v39 = vmul.f32 %v452_v40, %v2101_v60 }
 0x12c   :  { %v483_v11 = vmul.f32 %v452_v40, %v2118_v22  ;;  %v516_v63 = vmul.f32 %v452_v40, %v2105_v2  ;;  %v518_v6 = vmul.f32 %v452_v40, %v2120_v23  ;;  %v480_v54 = vmul.f32 %v2208_v51, %v2080_v37 }
 0x12d   :  { %v466_v10 = vrot.slane %v459_v3, %v2196_v29  ;;  %v482_v62 = vmul.f32 %v2208_v51, %v2112_v13  ;;  %v515_v60 = vmul.f32 %v2208_v51, %v2086_v42  ;;  %v517_v2 = vmul.f32 %v2208_v51, %v2114_v14 }
 0x12e   :  { %v477_v22 = vmul.f32 %v452_v40, %v2045_v12  ;;  %v2249_v23 = vmul.f32 %v452_v40, %v2064_v26  ;;  %v512_v37 = vmul.f32 %v452_v40, %v2048_v15 }
 0x12f   :  { %v473_v61 = vrot.slane %v466_v10, %v2196_v29 }
 0x131   :  { %v475_v18 = vsub.f32 %v42_v5, %v473_v61 }
 0x133   :  { %v2236_v8 = vrot.slane %v475_v18, %v2203_v50  ;;  %v2239_v32 = vrot.slane %v475_v18, %v2205_v35 }
 0x135   :  { %v2253_v41 = vadd.f32 %v2239_v32, %v487_v46  ;;  %v2256_v24 = vadd.f32 %v522_v52, %v2239_v32  ;;  %v2259_v13 = vadd.f32 %v2239_v32, %v485_v17  ;;  %v2262_v42 = vadd.f32 %v520_v57, %v2239_v32 }
 0x136   :  { %v2265_v14 = vadd.f32 %v2236_v8, %v484_v36  ;;  %v2268_v12 = vadd.f32 %v2236_v8, %v486_v56  ;;  %v2271_v15 = vadd.f32 %v519_v43, %v2236_v8  ;;  %v2274_v26 = vadd.f32 %v521_v53, %v2236_v8 }
 0x137   :  { %v546_v30 = vmax.f32 %v2253_v41, %v2256_v24  ;;  %v544_v27 = vmax.f32 %v2259_v13, %v2262_v42  ;;  %v2281_v21 = vadd.f32 %v2239_v32, %v481_v39  ;;  %v2284_v28 = vadd.f32 %v2239_v32, %v483_v11 }
 0x138   :  { %v543_v19 = vmax.f32 %v2265_v14, %v2271_v15  ;;  %v545_v34 = vmax.f32 %v2268_v12, %v2274_v26  ;;  %v2291_v44 = vadd.f32 %v516_v63, %v2239_v32  ;;  %v2294_v0 = vadd.f32 %v518_v6, %v2239_v32 }
 0x139   :  { %v558_v25 = vsub.f32 %v2253_v41, %v546_v30  ;;  %v594_v47 = vsub.f32 %v2256_v24, %v546_v30  ;;  %v556_v38 = vsub.f32 %v2259_v13, %v544_v27  ;;  %v592_v45 = vsub.f32 %v2262_v42, %v544_v27 }
 0x13a   :  { %v555_v33 = vsub.f32 %v2265_v14, %v543_v19  ;;  %v557_v49 = vsub.f32 %v2268_v12, %v545_v34  ;;  %v591_v3 = vsub.f32 %v2271_v15, %v543_v19  ;;  %v593_v10 = vsub.f32 %v2274_v26, %v545_v34 }
 0x13b   :  { %v581_v5 = vmul.f32 1.442695, %v558_v25  ;;  %v617_v61 = vmul.f32 1.442695, %v594_v47  ;;  %v577_v46 = vmul.f32 1.442695, %v556_v38  ;;  %v540_v52 = vmax.f32 %v2281_v21, %v2291_v44 }
 0x13c   :  { %v613_v17 = vmul.f32 1.442695, %v592_v45  ;;  %v542_v57 = vmax.f32 %v2284_v28, %v2294_v0  ;;  %v514_v36 = vmul.f32 %v452_v40, %v2071_v31  ;;  %v476_v56 = vmul.f32 %v2208_v51, %v2039_v4 }
 0x13d   :  { %1601 = vpow2.f32 %v581_v5  ;;  %v575_v18 = vmul.f32 1.442695, %v555_v33  ;;  %v579_v43 = vmul.f32 1.442695, %v557_v49  ;;  %v552_v53 = vsub.f32 %v2281_v21, %v540_v52 }
 0x13e   :  { %1603 = vpow2.f32 %v617_v61  ;;  %v611_v39 = vmul.f32 1.442695, %v591_v3  ;;  %v554_v11 = vsub.f32 %v2284_v28, %v542_v57  ;;  %v588_v63 = vsub.f32 %v2291_v44, %v540_v52 }
 0x13f   :  { %1605 = vpow2.f32 %v577_v46  ;;  %v590_v6 = vsub.f32 %v2294_v0, %v542_v57  ;;  %v2316_v30 = vadd.f32 %v2236_v8, %v480_v54  ;;  %v2319_v31 = vadd.f32 %v2236_v8, %v482_v62 }
 0x140   :  { %1607 = vpow2.f32 %v613_v17  ;;  %v615_v4 = vmul.f32 1.442695, %v593_v10  ;;  %v569_v40 = vmul.f32 1.442695, %v552_v53  ;;  %v478_v27 = vmul.f32 %v2208_v51, %v2050_v16 }
 0x141   :  { %1609 = vpow2.f32 %v575_v18  ;;  %v2324_v19 = vadd.f32 %v515_v60, %v2236_v8  ;;  %v2327_v34 = vadd.f32 %v517_v2, %v2236_v8  ;;  %v2330_v25 = vadd.f32 %v2239_v32, %v477_v22 }
 0x142   :  { %1611 = vpow2.f32 %v579_v43  ;;  %v573_v54 = vmul.f32 1.442695, %v554_v11  ;;  %v605_v62 = vmul.f32 1.442695, %v588_v63  ;;  %v2333_v47 = vadd.f32 %v512_v37, %v2239_v32 }
 0x143   :  { %1613 = vpow2.f32 %v611_v39  ;;  %v609_v38 = vmul.f32 1.442695, %v590_v6  ;;  %v539_v16 = vmax.f32 %v2316_v30, %v2324_v19  ;;  %v541_v60 = vmax.f32 %v2319_v31, %v2327_v34 }
 0x144   :  { %1615 = vpow2.f32 %v615_v4  ;;  %v2341_v2 = vadd.f32 %v2239_v32, %v2249_v23  ;;  %v2344_v22 = vadd.f32 %v514_v36, %v2239_v32  ;;  %v536_v37 = vmax.f32 %v2330_v25, %v2333_v47 }
 0x145   :  { %1617 = vpow2.f32 %v569_v40  ;;  %v551_v45 = vsub.f32 %v2316_v30, %v539_v16  ;;  %v553_v33 = vsub.f32 %v2319_v31, %v541_v60  ;;  %v587_v49 = vsub.f32 %v2324_v19, %v539_v16 }
 0x146   :  { %1619 = vpow2.f32 %v573_v54  ;;  %v589_v3 = vsub.f32 %v2327_v34, %v541_v60  ;;  %v548_v10 = vsub.f32 %v2330_v25, %v536_v37  ;;  %v511_v23 = vmul.f32 %v2208_v51, %v2042_v9 }
 0x147   :  { %1621 = vpow2.f32 %v605_v62  ;;  %v567_v32 = vmul.f32 1.442695, %v551_v45  ;;  %v571_v5 = vmul.f32 1.442695, %v553_v33  ;;  %v603_v61 = vmul.f32 1.442695, %v587_v49 }
 0x148   :  { %1623 = vpow2.f32 %v609_v38  ;;  %v607_v46 = vmul.f32 1.442695, %v589_v3  ;;  %v2356_v52 = vadd.f32 %v2236_v8, %v476_v56  ;;  %v513_v17 = vmul.f32 %v2208_v51, %v2055_v20 }
 0x149   :  { %1625 = vpow2.f32 %v567_v32  ;;  %v538_v57 = vmax.f32 %v2341_v2, %v2344_v22  ;;  %v584_v36 = vsub.f32 %v2333_v47, %v536_v37  ;;  %v2364_v9 = vadd.f32 %v511_v23, %v2236_v8 }
 0x14a   :  { %v1602_v18 = vpop.eup %1601  ;;  %1627 = vpow2.f32 %v571_v5  ;;  %v2367_v43 = vadd.f32 %v2236_v8, %v478_v27  ;;  %v2370_v56 = vadd.f32 %v513_v17, %v2236_v8  ;;  %v561_v20 = vmul.f32 1.442695, %v548_v10 }
 0x14b   :  { %v1604_v53 = vpop.eup %1603  ;;  %1629 = vpow2.f32 %v603_v61  ;;  %v550_v63 = vsub.f32 %v2341_v2, %v538_v57  ;;  %v597_v6 = vmul.f32 1.442695, %v584_v36  ;;  %v535_v4 = vmax.f32 %v2356_v52, %v2364_v9 }
 0x14c   :  { %v1606_v51 = vpop.eup %1605  ;;  %v630_v39 = vadd.f32 %v1604_v53, %v1602_v18  ;;  %1631 = vpow2.f32 %v607_v46  ;;  %v586_v8 = vsub.f32 %v2344_v22, %v538_v57  ;;  %v537_v54 = vmax.f32 %v2367_v43, %v2370_v56 }
 0x14d   :  { %v1608_v11 = vpop.eup %1607  ;;  %v565_v37 = vmul.f32 1.442695, %v550_v63  ;;  %v547_v45 = vsub.f32 %v2356_v52, %v535_v4  ;;  %v583_v17 = vsub.f32 %v2364_v9, %v535_v4 }
 0x14e   :  { %v2375_v40 = vpop.eup %1609  ;;  %1633 = vrcp.f32 %v630_v39  ;;  %v628_v27 = vadd.f32 %v1608_v11, %v1606_v51  ;;  %v601_v3 = vmul.f32 1.442695, %v586_v8  ;;  %v549_v10 = vsub.f32 %v2367_v43, %v537_v54 }
 0x14f   :  { %v2380_v62 = vpop.eup %1611  ;;  %1635 = vpow2.f32 %v561_v20  ;;  %v559_v46 = vmul.f32 1.442695, %v547_v45  ;;  %v585_v63 = vsub.f32 %v2370_v56, %v537_v54  ;;  %v595_v8 = vmul.f32 1.442695, %v583_v17 }
 0x150   :  { %v1614_v38 = vpop.eup %1613  ;;  %1637 = vrcp.f32 %v628_v27  ;;  %v563_v20 = vmul.f32 1.442695, %v549_v10 }
 0x151   :  { %v1616_v16 = vpop.eup %1615  ;;  %v627_v60 = vadd.f32 %v1614_v38, %v2375_v40  ;;  %1639 = vpow2.f32 %v597_v6  ;;  %v599_v45 = vmul.f32 1.442695, %v585_v63 }
 0x152   :  { %v2384_v33 = vpop.eup %1617  ;;  %v629_v49 = vadd.f32 %v1616_v16, %v2380_v62 }
 0x153   :  { %v2388_v23 = vpop.eup %1619  ;;  %1641 = vrcp.f32 %v627_v60 }
 0x154   :  { %v1622_v32 = vpop.eup %1621  ;;  %1643 = vrcp.f32 %v629_v49 }
 0x155   :  { %v2390_v5 = vpop.eup %1623  ;;  %v624_v61 = vadd.f32 %v1622_v32, %v2384_v33  ;;  %1645 = vpow2.f32 %v565_v37 }
 0x156   :  { %v2394_v57 = vpop.eup %1625  ;;  %v626_v36 = vadd.f32 %v2390_v5, %v2388_v23  ;;  %1647 = vpow2.f32 %v601_v3 }
 0x157   :  { %v2398_v39 = vpop.eup %1627  ;;  %1649 = vrcp.f32 %v624_v61 }
 0x158   :  { %v2401_v6 = vpop.eup %1629  ;;  %1651 = vrcp.f32 %v626_v36 }
 0x159   :  { %v2403_v27 = vpop.eup %1631  ;;  %v623_v4 = vadd.f32 %v2401_v6, %v2394_v57  ;;  %1653 = vpow2.f32 %v559_v46 }
 0x15a   :  { %v625_v60 = vadd.f32 %v2403_v27, %v2398_v39  ;;  %1655 = vpow2.f32 %v563_v20 }
 0x15b   :  { %v1634_v37 = vpop.eup %1633  ;;  %1657 = vrcp.f32 %v623_v4 }
 0x15c   :  { %v2409_v49 = vpop.eup %1635  ;;  %v690_v54 = vmul.f32 %v1634_v37, %v1604_v53  ;;  %v654_v3 = vmul.f32 %v1634_v37, %v1602_v18  ;;  %1659 = vrcp.f32 %v625_v60 }
 0x15d   :  { %v1638_v10 = vpop.eup %1637  ;;  %1661 = vpow2.f32 %v595_v8 }
 0x15e   :  { %v2411_v61 = vpop.eup %1639  ;;  %v702_v36 = vmul.f32 %v690_v54, %v2256_v24  ;;  %v652_v46 = vmul.f32 %v1638_v10, %v1606_v51  ;;  %v666_v17 = vmul.f32 %v654_v3, %v2253_v41  ;;  %v688_v35 = vmul.f32 %v1638_v10, %v1608_v11 }
 0x15f   :  { %1663 = vpow2.f32 %v599_v45  ;;  %v620_v18 = vadd.f32 %v2411_v61, %v2409_v49 }
 0x160   :  { %v1642_v20 = vpop.eup %1641  ;;  %1665 = vtanh.f32 %v702_v36  ;;  %v664_v63 = vmul.f32 %v652_v46, %v2259_v13  ;;  %v700_v4 = vmul.f32 %v688_v35, %v2262_v42 }
 0x161   :  { %v1644_v53 = vpop.eup %1643  ;;  %1667 = vtanh.f32 %v666_v17  ;;  %v651_v8 = vmul.f32 %v1642_v20, %v2375_v40  ;;  %v687_v60 = vmul.f32 %v1642_v20, %v1614_v38  ;;  %v1549_v20 = vld [vmem:[%s3209_s1 + $0xb8] sm:$0x1] }
 0x162   :  { %v2420_v24 = vpop.eup %1645  ;;  %1669 = vtanh.f32 %v664_v63  ;;  %v653_v41 = vmul.f32 %v1644_v53, %v2380_v62  ;;  %v689_v51 = vmul.f32 %v1644_v53, %v1616_v16  ;;  %v724_v63 = vld [vmem:[%s3209_s1 + $0x48] sm:$0xff] }
 0x163   :  { %v2423_v11 = vpop.eup %1647  ;;  %1671 = vtanh.f32 %v700_v4  ;;  %v663_v13 = vmul.f32 %v651_v8, %v2265_v14  ;;  %v699_v35 = vmul.f32 %v687_v60, %v2271_v15  ;;  %v1547_v60 = vld [vmem:[%s3209_s1 + $0xa8] sm:$0xff] }
 0x164   :  { %v1650_v42 = vpop.eup %1649  ;;  %v665_v37 = vmul.f32 %v653_v41, %v2268_v12  ;;  %v701_v45 = vmul.f32 %v689_v51, %v2274_v26  ;;  %1673 = vrcp.f32 %v620_v18 }
 0x165   :  { %v1652_v40 = vpop.eup %1651  ;;  %1675 = vtanh.f32 %v663_v13  ;;  %v648_v38 = vmul.f32 %v1650_v42, %v2384_v33  ;;  %v684_v54 = vmul.f32 %v1650_v42, %v1622_v32 }
 0x166   :  { %v2430_v62 = vpop.eup %1653  ;;  %1677 = vtanh.f32 %v665_v37  ;;  %v650_v16 = vmul.f32 %v1652_v40, %v2388_v23  ;;  %v686_v14 = vmul.f32 %v1652_v40, %v2390_v5 }
 0x167   :  { %v2434_v3 = vpop.eup %1655  ;;  %1679 = vtanh.f32 %v699_v35  ;;  %v660_v12 = vmul.f32 %v648_v38, %v2281_v21  ;;  %v696_v15 = vmul.f32 %v684_v54, %v2291_v44 }
 0x168   :  { %v1658_v26 = vpop.eup %1657  ;;  %1681 = vtanh.f32 %v701_v45  ;;  %v662_v10 = vmul.f32 %v650_v16, %v2284_v28  ;;  %v698_v33 = vmul.f32 %v686_v14, %v2294_v0  ;;  %v723_v45 = vld [vmem:[%s3209_s1 + $0x40] sm:$0xff]  ;;  %v725_v14 = vld [vmem:[%s3209_s1 + $0x50] sm:$0x1] }
 0x169   :  { %v1660_v32 = vpop.eup %1659  ;;  %1683 = vtanh.f32 %v660_v12  ;;  %v647_v36 = vmul.f32 %v1658_v26, %v2394_v57  ;;  %v683_v23 = vmul.f32 %v1658_v26, %v2401_v6  ;;  %v1546_v26 = vld [vmem:[%s3209_s1 + $0xa0] sm:$0xff] }
 0x16a   :  { %v2442_v5 = vpop.eup %1661  ;;  %1685 = vtanh.f32 %v662_v10  ;;  %v649_v46 = vmul.f32 %v1660_v32, %v2398_v39  ;;  %v685_v21 = vmul.f32 %v1660_v32, %v2403_v27  ;;  %v622_v39 = vadd.f32 %v2423_v11, %v2420_v24 }
 0x16b   :  { %1687 = vtanh.f32 %v696_v15  ;;  %v659_v44 = vmul.f32 %v647_v36, %v2316_v30  ;;  %v695_v28 = vmul.f32 %v683_v23, %v2324_v19  ;;  %v726_v30 = vld [vmem:[%s3209_s1 + $0x58] sm:$0x1] }
 0x16c   :  { %v2448_v17 = vpop.eup %1663  ;;  %1689 = vtanh.f32 %v698_v33  ;;  %v661_v0 = vmul.f32 %v649_v46, %v2319_v31  ;;  %v697_v57 = vmul.f32 %v685_v21, %v2327_v34  ;;  %v619_v31 = vadd.f32 %v2442_v5, %v2430_v62  ;;  %v1548_v46 = vld [vmem:[%s3209_s1 + $0xb0] sm:$0x1] }
 0x16d   :  { %v1666_v6 = vpop.eup %1665  ;;  %1691 = vtanh.f32 %v659_v44  ;;  %v621_v18 = vadd.f32 %v2448_v17, %v2434_v3 }
 0x16e   :  { %v1668_v27 = vpop.eup %1667  ;;  %v787_v19 = vmul.f32 -1.0, %v1666_v6  ;;  %1693 = vtanh.f32 %v661_v0 }
 0x16f   :  { %v1670_v34 = vpop.eup %1669  ;;  %v738_v4 = vmul.f32 -1.0, %v1668_v27  ;;  %1695 = vtanh.f32 %v695_v28 }
 0x170   :  { %v1672_v53 = vpop.eup %1671  ;;  %v736_v8 = vmul.f32 -1.0, %v1670_v34  ;;  %v799_v41 = vadd.f32 %v1549_v20, %v787_v19  ;;  %1697 = vtanh.f32 %v697_v57 }
 0x171   :  { %v1674_v51 = vpop.eup %1673  ;;  %v750_v13 = vadd.f32 %v738_v4, %v726_v30  ;;  %v785_v35 = vmul.f32 -1.0, %v1672_v53  ;;  %1699 = vrcp.f32 %v622_v39  ;;  %v722_v39 = vld [vmem:[%s3209_s1 + $0x38] sm:$0xff] }
 0x172   :  { %v1676_v42 = vpop.eup %1675  ;;  %v748_v37 = vadd.f32 %v736_v8, %v724_v63  ;;  %1561 = vst [vmem:[%s3210_s6 + $0xb8] sm:$0x1] %v799_v41  ;;  %v644_v40 = vmul.f32 %v1674_v51, %v2409_v49  ;;  %v680_v38 = vmul.f32 %v1674_v51, %v2411_v61  ;;  %1701 = vrcp.f32 %v619_v31  ;;  %v1543_v63 = vld [vmem:[%s3209_s1 + $0x88] sm:$0xff]  ;;  %v1545_v53 = vld [vmem:[%s3209_s1 + $0x98] sm:$0xff] }
 0x173   :  { %v1678_v54 = vpop.eup %1677  ;;  %762 = vst [vmem:[%s3210_s6 + $0x58] sm:$0x1] %v750_v13  ;;  %v797_v16 = vadd.f32 %v1547_v60, %v785_v35  ;;  %v735_v12 = vmul.f32 -1.0, %v1676_v42  ;;  %1703 = vrcp.f32 %v621_v18  ;;  %v719_v42 = vld [vmem:[%s3209_s1 + $0x20] sm:$0xff] }
 0x174   :  { %v1680_v15 = vpop.eup %1679  ;;  %760 = vst [vmem:[%s3210_s6 + $0x48] sm:$0xff] %v748_v37  ;;  %v822_v49 = vpack.c.bf16 %v750_v13, %v748_v37  ;;  %v737_v61 = vmul.f32 -1.0, %v1678_v54  ;;  %v656_v10 = vmul.f32 %v644_v40, %v2330_v25  ;;  %v692_v33 = vmul.f32 %v680_v38, %v2333_v47  ;;  %v720_v25 = vld [vmem:[%s3209_s1 + $0x28] sm:$0xff]  ;;  %v721_v40 = vld [vmem:[%s3209_s1 + $0x30] sm:$0xff] }
 0x175   :  { %v1682_v32 = vpop.eup %1681  ;;  %1559 = vst [vmem:[%s3210_s6 + $0xa8] sm:$0xff] %v797_v16  ;;  %v824_v36 = vpack.c.bf16 %v799_v41, %v797_v16  ;;  %v747_v23 = vadd.f32 %v735_v12, %v723_v45  ;;  %v784_v21 = vmul.f32 -1.0, %v1680_v15 }
 0x176   :  { %v1684_v44 = vpop.eup %1683  ;;  %v829_v28 = vand.u32 %v822_v49, %v1901_v7  ;;  %v749_v0 = vadd.f32 %v737_v61, %v725_v14  ;;  %v786_v57 = vmul.f32 -1.0, %v1682_v32  ;;  %1705 = vtanh.f32 %v656_v10  ;;  %v1542_v49 = vld [vmem:[%s3209_s1 + $0x80] sm:$0xff] }
 0x177   :  { %v1686_v47 = vpop.eup %1685  ;;  %v835_v6 = vand.u32 %v824_v36, %v1901_v7  ;;  %759 = vst [vmem:[%s3210_s6 + $0x40] sm:$0xff] %v747_v23  ;;  %v796_v20 = vadd.f32 %v1546_v26, %v784_v21  ;;  %v732_v27 = vmul.f32 -1.0, %v1684_v44  ;;  %1707 = vtanh.f32 %v692_v33 }
 0x178   :  { %v1688_v30 = vpop.eup %1687  ;;  %847 = vmatprep.subr.bf16.mxu0 %v829_v28  ;;  %761 = vst [vmem:[%s3210_s6 + $0x50] sm:$0x1] %v749_v0  ;;  %v821_v19 = vpack.c.bf16 %v749_v0, %v747_v23  ;;  %v798_v31 = vadd.f32 %v1548_v46, %v786_v57  ;;  %v734_v34 = vmul.f32 -1.0, %v1686_v47 }
 0x179   :  { %v1690_v4 = vpop.eup %1689  ;;  %910 = vmatprep.subr.bf16.mxu1 %v835_v6  ;;  %1558 = vst [vmem:[%s3210_s6 + $0xa0] sm:$0xff] %v796_v20  ;;  %v744_v18 = vadd.f32 %v732_v27, %v720_v25  ;;  %v781_v8 = vmul.f32 -1.0, %v1688_v30 }
 0x17a   :  { %v1692_v60 = vpop.eup %1691  ;;  %v826_v41 = vand.u32 %v821_v19, %v1901_v7  ;;  %1560 = vst [vmem:[%s3210_s6 + $0xb0] sm:$0x1] %v798_v31  ;;  %v823_v51 = vpack.c.bf16 %v798_v31, %v796_v20  ;;  %v746_v13 = vadd.f32 %v734_v34, %v722_v39  ;;  %v783_v35 = vmul.f32 -1.0, %v1690_v4  ;;  %v1539_v19 = vld [vmem:[%s3209_s1 + $0x68] sm:$0xff] }
 0x17b   :  { %v1694_v37 = vpop.eup %1693  ;;  %756 = vst [vmem:[%s3210_s6 + $0x28] sm:$0xff] %v744_v18  ;;  %v793_v45 = vadd.f32 %v1543_v63, %v781_v8  ;;  %v731_v38 = vmul.f32 -1.0, %v1692_v60  ;;  %v715_v60 = vld [vmem:[%s3209_s1] sm:$0xff] }
 0x17c   :  { %v1696_v54 = vpop.eup %1695  ;;  %848 = vmatpush1.bf16.msra.mxu0 %v826_v41  ;;  %v832_v16 = vand.u32 %v823_v51, %v1901_v7  ;;  %758 = vst [vmem:[%s3210_s6 + $0x38] sm:$0xff] %v746_v13  ;;  %v818_v14 = vpack.c.bf16 %v746_v13, %v744_v18  ;;  %v795_v12 = vadd.f32 %v1545_v53, %v783_v35  ;;  %v733_v15 = vmul.f32 -1.0, %v1694_v37  ;;  %v1544_v7 = vld [vmem:[%s3209_s1 + $0x90] sm:$0xff]  ;;  %v1541_v18 = vld [vmem:[%s3209_s1 + $0x78] sm:$0xff] }
 0x17d   :  { %v1698_v61 = vpop.eup %1697  ;;  %1555 = vst [vmem:[%s3210_s6 + $0x88] sm:$0xff] %v793_v45  ;;  %v743_v26 = vadd.f32 %v731_v38, %v719_v42  ;;  %v780_v10 = vmul.f32 -1.0, %v1696_v54  ;;  %v717_v13 = vld [vmem:[%s3209_s1 + $0x10] sm:$0xff] }
 0x17e   :  { %v1700_v33 = vpop.eup %1699  ;;  %911 = vmatpush1.bf16.msra.mxu1 %v832_v16  ;;  %849 = vmatprep.subr.bf16.mxu0 %v818_v14  ;;  %1557 = vst [vmem:[%s3210_s6 + $0x98] sm:$0xff] %v795_v12  ;;  %v820_v32 = vpack.c.bf16 %v795_v12, %v793_v45  ;;  %v745_v36 = vadd.f32 %v733_v15, %v721_v40  ;;  %v782_v23 = vmul.f32 -1.0, %v1698_v61  ;;  %v1538_v40 = vld [vmem:[%s3209_s1 + $0x60] sm:$0xff]  ;;  %v1540_v14 = vld [vmem:[%s3209_s1 + $0x70] sm:$0xff] }
 0x17f   :  { %v1702_v46 = vpop.eup %1701  ;;  %755 = vst [vmem:[%s3210_s6 + $0x20] sm:$0xff] %v743_v26  ;;  %v792_v21 = vadd.f32 %v1542_v49, %v780_v10  ;;  %v646_v44 = vmul.f32 %v1700_v33, %v2420_v24  ;;  %v682_v28 = vmul.f32 %v1700_v33, %v2423_v11 }
 0x180   :  { %v1704_v0 = vpop.eup %1703  ;;  %912 = vmatprep.subr.bf16.mxu1 %v820_v32  ;;  %757 = vst [vmem:[%s3210_s6 + $0x30] sm:$0xff] %v745_v36  ;;  %v817_v57 = vpack.c.bf16 %v745_v36, %v743_v26  ;;  %v794_v25 = vadd.f32 %v1544_v7, %v782_v23  ;;  %v643_v47 = vmul.f32 %v1702_v46, %v2430_v62  ;;  %v3229_v32 = vmov 0  }
 0x181   :  { %v679_v6 = vmul.f32 %v1702_v46, %v2442_v5  ;;  %1554 = vst [vmem:[%s3210_s6 + $0x80] sm:$0xff] %v792_v21  ;;  %v658_v24 = vmul.f32 %v646_v44, %v2341_v2  ;;  %v694_v11 = vmul.f32 %v682_v28, %v2344_v22  ;;  %v645_v20 = vmul.f32 %v1704_v0, %v2434_v3  ;;  %v716_v2 = vld [vmem:[%s3209_s1 + $0x8] sm:$0xff] }
 0x182   :  { %v681_v39 = vmul.f32 %v1704_v0, %v2448_v17  ;;  %850 = vmatpush1.bf16.msra.mxu0 %v817_v57  ;;  %1556 = vst [vmem:[%s3210_s6 + $0x90] sm:$0xff] %v794_v25  ;;  %v819_v62 = vpack.c.bf16 %v794_v25, %v792_v21  ;;  %v655_v5 = vmul.f32 %v643_v47, %v2356_v52 }
 0x183   :  { %v1706_v27 = vpop.eup %1705  ;;  %1709 = vtanh.f32 %v658_v24  ;;  %v657_v22 = vmul.f32 %v645_v20, %v2367_v43  ;;  %v691_v3 = vmul.f32 %v679_v6, %v2364_v9  ;;  %v718_v43 = vld [vmem:[%s3209_s1 + $0x18] sm:$0xff] }
 0x184   :  { %v1708_v30 = vpop.eup %1707  ;;  %913 = vmatpush1.bf16.msra.mxu1 %v819_v62  ;;  %v728_v17 = vmul.f32 -1.0, %v1706_v27  ;;  %1711 = vtanh.f32 %v694_v11  ;;  %v693_v52 = vmul.f32 %v681_v39, %v2370_v56 }
 0x185   :  { %v777_v31 = vmul.f32 -1.0, %v1708_v30  ;;  %1713 = vtanh.f32 %v655_v5 }
 0x186   :  { %v740_v34 = vadd.f32 %v728_v17, %v716_v2  ;;  %1715 = vtanh.f32 %v657_v22  ;;  %v3230_v22 = vld [vmem:[#allocation2_spill] sm:$0xff] }
 0x187   :  { %v789_v63 = vadd.f32 %v1539_v19, %v777_v31  ;;  %1717 = vtanh.f32 %v691_v3 }
 0x188   :  { %752 = vst [vmem:[%s3210_s6 + $0x8] sm:$0xff] %v740_v34  ;;  %1719 = vtanh.f32 %v693_v52 }
 0x189   :  { %1551 = vst [vmem:[%s3210_s6 + $0x68] sm:$0xff] %v789_v63 }
 0x190   :  { %v1710_v9 = vpop.eup %1709 }
 0x191   :  { %v1712_v56 = vpop.eup %1711  ;;  %v730_v4 = vmul.f32 -1.0, %v1710_v9 }
 0x192   :  { %v1714_v53 = vpop.eup %1713  ;;  %v779_v8 = vmul.f32 -1.0, %v1712_v56 }
 0x193   :  { %v1716_v41 = vpop.eup %1715  ;;  %v742_v51 = vadd.f32 %v730_v4, %v718_v43  ;;  %v727_v35 = vmul.f32 -1.0, %v1714_v53 }
 0x194   :  { %v1718_v42 = vpop.eup %1717  ;;  %v791_v37 = vadd.f32 %v1541_v18, %v779_v8  ;;  %v729_v45 = vmul.f32 -1.0, %v1716_v41 }
 0x195   :  { %v1720_v38 = vpop.eup %1719  ;;  %754 = vst [vmem:[%s3210_s6 + $0x18] sm:$0xff] %v742_v51  ;;  %v814_v54 = vpack.c.bf16 %v742_v51, %v740_v34  ;;  %v739_v16 = vadd.f32 %v727_v35, %v715_v60  ;;  %v776_v12 = vmul.f32 -1.0, %v1718_v42 }
 0x196   :  { %1553 = vst [vmem:[%s3210_s6 + $0x78] sm:$0xff] %v791_v37  ;;  %v816_v15 = vpack.c.bf16 %v791_v37, %v789_v63  ;;  %v741_v49 = vadd.f32 %v729_v45, %v717_v13  ;;  %v778_v61 = vmul.f32 -1.0, %v1720_v38 }
 0x197   :  { %851 = vmatprep.subr.bf16.mxu0 %v814_v54  ;;  %751 = vst [vmem:[%s3210_s6] sm:$0xff] %v739_v16  ;;  %v788_v26 = vadd.f32 %v1538_v40, %v776_v12  ;;  %v3231_v12 = vld [vmem:[#allocation3_spill] sm:$0xff] }
 0x198   :  { %914 = vmatprep.subr.bf16.mxu1 %v816_v15  ;;  %753 = vst [vmem:[%s3210_s6 + $0x10] sm:$0xff] %v741_v49  ;;  %v813_v7 = vpack.c.bf16 %v741_v49, %v739_v16  ;;  %v790_v10 = vadd.f32 %v1540_v14, %v778_v61 }
 0x199   :  { %1550 = vst [vmem:[%s3210_s6 + $0x60] sm:$0xff] %v788_v26 }
 0x19a   :  { %852 = vmatpush1.bf16.msra.mxu0 %v813_v7  ;;  %1552 = vst [vmem:[%s3210_s6 + $0x70] sm:$0xff] %v790_v10  ;;  %v815_v33 = vpack.c.bf16 %v790_v10, %v788_v26 }
 0x19c   :  { %915 = vmatpush1.bf16.msra.mxu1 %v815_v33 }
 0x19d   :  { %1562 = vmatmul.mubr.msk.bf16.vlgmr.msra.gmra.mxu0 %vm110_vm2, %v1984_v48 }
 0x19e   :  { %879 = vmatprep.mubr.bf16.mxu0 %v3229_v32 }
 0x19f   :  { %1565 = vmatmul.mubr.msk.bf16.vlgmr.msra.gmra.mxu1 %vm110_vm2, %v1984_v48 }
 0x1a0   :  { %942 = vmatprep.mubr.bf16.mxu1 %v3229_v32 }
 0x1a5   :  { %1563 = vmatmul.mubr.msk.bf16.gmra.mxu0 %vm110_vm2, %v2010_v55 }
 0x1a6   :  { %889 = vmatprep.mubr.bf16.mxu0 %v3229_v32 }
 0x1a7   :  { %1566 = vmatmul.mubr.msk.bf16.gmra.mxu1 %vm110_vm2, %v2010_v55 }
 0x1a8   :  { %952 = vmatprep.mubr.bf16.mxu1 %v3229_v32 }
 0x1ad   :  { %1564 = vmatmul.mubr.msk.bf16.gmra.mxu0 %vm110_vm2, %v2024_v58 }
 0x1af   :  { %1567 = vmatmul.mubr.msk.bf16.gmra.mxu1 %vm110_vm2, %v2024_v58 }
 0x25d   :  { %v871_v36 = vpop.f32.mrf.mxu0 }
 0x25e   :  { %v872_v48 = vadd.f32 %v871_v36, %v2032_v59 }
 0x25f   :  { %v934_v23 = vpop.f32.mrf.mxu1  ;;  %v873_v46 = vpop.f32.mrf.mxu0 }
 0x260   :  { %v935_v21 = vadd.f32 %v934_v23, %v2032_v59  ;;  %v874_v44 = vadd.f32 %v873_v46, %v2032_v59  ;;  %v2642_v57 = vmax.f32 %v872_v48, 0.0 }
 0x261   :  { %v936_v28 = vpop.f32.mrf.mxu1  ;;  %v875_v0 = vpop.f32.mrf.mxu0 }
 0x262   :  { %v937_v55 = vadd.f32 %v936_v28, %v2032_v59  ;;  %v2644_v25 = vmax.f32 %v935_v21, 0.0  ;;  %v876_v47 = vadd.f32 %v875_v0, %v2036_v1  ;;  %v2647_v24 = vmax.f32 %v874_v44, 0.0 }
 0x263   :  { %v938_v58 = vpop.f32.mrf.mxu1  ;;  %v877_v6 = vpop.f32.mrf.mxu0  ;;  %v1011_v30 = vmul.f32 %v2642_v57, %v2642_v57 }
 0x264   :  { %v939_v11 = vadd.f32 %v938_v58, %v2036_v1  ;;  %v2650_v20 = vmax.f32 %v937_v55, 0.0  ;;  %v2652_v39 = vmax.f32 %v876_v47, 0.0  ;;  %v878_v62 = vadd.f32 %v877_v6, %v2036_v1 }
 0x265   :  { %v940_v5 = vpop.f32.mrf.mxu1  ;;  %v881_v59 = vpop.f32.mrf.mxu0  ;;  %v1073_v17 = vmul.f32 %v2644_v25, %v2644_v25  ;;  %v1012_v63 = vmul.f32 %v2647_v24, %v2647_v24 }
 0x266   :  { %v2655_v27 = vmax.f32 %v939_v11, 0.0  ;;  %v941_v2 = vadd.f32 %v940_v5, %v2036_v1  ;;  %v882_v3 = vadd.f32 %v881_v59, %v3230_v22  ;;  %v1013_v19 = vmul.f32 %v2652_v39, %v2652_v39 }
 0x267   :  { %v2665_v52 = vmax.f32 %v878_v62, 0.0  ;;  %v944_v31 = vpop.f32.mrf.mxu1  ;;  %v883_v34 = vpop.f32.mrf.mxu0  ;;  %v1074_v56 = vmul.f32 %v2650_v20, %v2650_v20  ;;  %v987_v4 = vadd.f32 %v2652_v39, %v2642_v57 }
 0x268   :  { %v1075_v1 = vmul.f32 %v2655_v27, %v2655_v27  ;;  %v2671_v9 = vmax.f32 %v941_v2, 0.0  ;;  %v2673_v43 = vmax.f32 %v882_v3, 0.0  ;;  %v945_v53 = vadd.f32 %v944_v31, %v3230_v22  ;;  %v3232_v31 = vld [vmem:[#allocation4_spill] sm:$0xff] }
 0x269   :  { %v1014_v18 = vmul.f32 %v2665_v52, %v2665_v52  ;;  %v946_v8 = vpop.f32.mrf.mxu1  ;;  %v885_v60 = vpop.f32.mrf.mxu0  ;;  %v1023_v41 = vadd.f32 %v1013_v19, %v1011_v30  ;;  %v1047_v51 = vadd.f32 %v2655_v27, %v2644_v25  ;;  %v999_v35 = vadd.f32 %v2665_v52, %v2647_v24 }
 0x26a   :  { %v1085_v13 = vadd.f32 %v1075_v1, %v1073_v17  ;;  %v1076_v42 = vmul.f32 %v2671_v9, %v2671_v9  ;;  %v1015_v37 = vmul.f32 %v2673_v43, %v2673_v43  ;;  %v2690_v45 = vmax.f32 %v945_v53, 0.0 }
 0x26b   :  { %v884_v40 = vadd.f32 %v883_v34, %v3230_v22  ;;  %v948_v38 = vpop.f32.mrf.mxu1  ;;  %v887_v54 = vpop.f32.mrf.mxu0  ;;  %v1059_v16 = vadd.f32 %v2671_v9, %v2650_v20  ;;  %v947_v14 = vadd.f32 %v946_v8, %v3230_v22  ;;  %v886_v15 = vadd.f32 %v885_v60, %v3231_v12 }
 0x26c   :  { %v949_v49 = vadd.f32 %v948_v38, %v3231_v12  ;;  %v1035_v61 = vadd.f32 %v1014_v18, %v1012_v63  ;;  %v988_v26 = vadd.f32 %v987_v4, %v2673_v43  ;;  %v1077_v7 = vmul.f32 %v2690_v45, %v2690_v45 }
 0x26d   :  { %v2701_v10 = vmax.f32 %v884_v40, 0.0  ;;  %v950_v33 = vpop.f32.mrf.mxu1  ;;  %v891_v32 = vpop.f32.mrf.mxu0  ;;  %v2703_v36 = vmax.f32 %v947_v14, 0.0  ;;  %v2705_v48 = vmax.f32 %v886_v15, 0.0  ;;  %v888_v46 = vadd.f32 %v887_v54, %v3231_v12 }
 0x26e   :  { %v2707_v23 = vmax.f32 %v949_v49, 0.0  ;;  %v1097_v21 = vadd.f32 %v1076_v42, %v1074_v56  ;;  %v1024_v44 = vadd.f32 %v1023_v41, %v1015_v37  ;;  %v951_v0 = vadd.f32 %v950_v33, %v3231_v12  ;;  %v3233_v37 = vld [vmem:[#allocation5_spill] sm:$0xff] }
 0x26f   :  { %v1016_v28 = vmul.f32 %v2701_v10, %v2701_v10  ;;  %v954_v55 = vpop.f32.mrf.mxu1  ;;  %v893_v47 = vpop.f32.mrf.mxu0  ;;  %v1048_v58 = vadd.f32 %v1047_v51, %v2690_v45  ;;  %v1086_v6 = vadd.f32 %v1085_v13, %v1077_v7  ;;  %v1078_v11 = vmul.f32 %v2703_v36, %v2703_v36 }
 0x270   :  { %v1017_v62 = vmul.f32 %v2705_v48, %v2705_v48  ;;  %v1000_v5 = vadd.f32 %v999_v35, %v2701_v10  ;;  %v1060_v59 = vadd.f32 %v1059_v16, %v2703_v36  ;;  %v1079_v2 = vmul.f32 %v2707_v23, %v2707_v23 }
 0x271   :  { %v2722_v22 = vmax.f32 %v888_v46, 0.0  ;;  %v956_v3 = vpop.f32.mrf.mxu1  ;;  %v1036_v30 = vadd.f32 %v1035_v61, %v1016_v28  ;;  %v989_v17 = vadd.f32 %v988_v26, %v2705_v48  ;;  %v2725_v19 = vmax.f32 %v951_v0, 0.0  ;;  %v895_v63 = vpop.f32.mrf.mxu0 }
 0x272   :  { %v892_v34 = vadd.f32 %v891_v32, %v3232_v31  ;;  %v1098_v1 = vadd.f32 %v1097_v21, %v1078_v11  ;;  %v1049_v56 = vadd.f32 %v1048_v58, %v2707_v23  ;;  %v955_v18 = vadd.f32 %v954_v55, %v3232_v31 }
 0x273   :  { %v1018_v4 = vmul.f32 %v2722_v22, %v2722_v22  ;;  %v1025_v53 = vadd.f32 %v1024_v44, %v1017_v62  ;;  %v1080_v8 = vmul.f32 %v2725_v19, %v2725_v19  ;;  %v894_v41 = vadd.f32 %v893_v47, %v3232_v31  ;;  %v958_v51 = vpop.f32.mrf.mxu1  ;;  %v897_v46 = vpop.f32.mrf.mxu0 }
 0x274   :  { %v2734_v60 = vmax.f32 %v892_v34, 0.0  ;;  %v1087_v13 = vadd.f32 %v1086_v6, %v1079_v2  ;;  %v2737_v35 = vmax.f32 %v955_v18, 0.0  ;;  %v957_v42 = vadd.f32 %v956_v3, %v3232_v31 }
 0x275   :  { %v896_v40 = vadd.f32 %v895_v63, %v3233_v37  ;;  %v1001_v38 = vadd.f32 %v1000_v5, %v2722_v22  ;;  %v1061_v54 = vadd.f32 %v1060_v59, %v2725_v19  ;;  %v2745_v14 = vmax.f32 %v894_v41, 0.0  ;;  %v960_v21 = vpop.f32.mrf.mxu1 }
 0x276   :  { %v1019_v16 = vmul.f32 %v2734_v60, %v2734_v60  ;;  %v1037_v12 = vadd.f32 %v1036_v30, %v1018_v4  ;;  %v1081_v15 = vmul.f32 %v2737_v35, %v2737_v35  ;;  %v2749_v49 = vmax.f32 %v957_v42, 0.0 }
 0x277   :  { %v2751_v61 = vmax.f32 %v896_v40, 0.0  ;;  %v1099_v26 = vadd.f32 %v1098_v1, %v1080_v8  ;;  %v990_v7 = vadd.f32 %v989_v17, %v2734_v60  ;;  %v1050_v33 = vadd.f32 %v1049_v56, %v2737_v35 }
 0x278   :  { %v959_v32 = vadd.f32 %v958_v51, %v3233_v37  ;;  %v1026_v44 = vadd.f32 %v1025_v53, %v1019_v16  ;;  %v1002_v28 = vadd.f32 %v1001_v38, %v2745_v14  ;;  %v1020_v0 = vmul.f32 %v2745_v14, %v2745_v14 }
 0x279   :  { %v991_v55 = vsel %vm290_vm3, %v2751_v61, 0.0  ;;  %v1082_v47 = vmul.f32 %v2749_v49, %v2749_v49  ;;  %v1021_v6 = vmul.f32 %v2751_v61, %v2751_v61  ;;  %v1088_v62 = vadd.f32 %v1087_v13, %v1081_v15 }
 0x27a   :  { %v992_v58 = vadd.f32 %v991_v55, %v990_v7  ;;  %v2765_v11 = vmax.f32 %v959_v32, 0.0  ;;  %v1062_v5 = vadd.f32 %v1061_v54, %v2749_v49  ;;  %v898_v59 = vadd.f32 %v897_v46, %v3233_v37 }
 0x27b   :  { %v961_v2 = vadd.f32 %v960_v21, %v3233_v37  ;;  %v1027_v30 = vsel %vm290_vm3, %v1021_v6, 0.0  ;;  %v1038_v4 = vadd.f32 %v1037_v12, %v1020_v0  ;;  %v1100_v18 = vadd.f32 %v1099_v26, %v1082_v47 }
 0x27c   :  { %v993_v3 = vrot.slane %v992_v58, 4  ;;  %v1051_v17 = vsel %vm290_vm3, %v2765_v11, 0.0  ;;  %v1083_v31 = vmul.f32 %v2765_v11, %v2765_v11  ;;  %v1028_v34 = vadd.f32 %v1027_v30, %v1026_v44 }
 0x27d   :  { %v1052_v63 = vadd.f32 %v1051_v17, %v1050_v33  ;;  %v2775_v1 = vmax.f32 %v898_v59, 0.0  ;;  %v2777_v56 = vmax.f32 %v961_v2, 0.0 }
 0x27e   :  { %v994_v53 = vadd.f32 %v993_v3, %v992_v58  ;;  %v1089_v8 = vsel %vm290_vm3, %v1083_v31, 0.0  ;;  %v1029_v41 = vrot.slane %v1028_v34, 4 }
 0x27f   :  { %v1053_v51 = vrot.slane %v1052_v63, 4  ;;  %v1090_v13 = vadd.f32 %v1089_v8, %v1088_v62  ;;  %v1003_v42 = vsel %vm290_vm3, %v2775_v1, 0.0  ;;  %v1022_v38 = vmul.f32 %v2775_v1, %v2775_v1 }
 0x280   :  { %v995_v37 = vrot.slane %v994_v53, 2  ;;  %v1004_v40 = vadd.f32 %v1003_v42, %v1002_v28  ;;  %v1063_v54 = vsel %vm290_vm3, %v2777_v56, 0.0  ;;  %v1030_v16 = vadd.f32 %v1029_v41, %v1028_v34 }
 0x281   :  { %v1054_v12 = vadd.f32 %v1053_v51, %v1052_v63  ;;  %v1091_v15 = vrot.slane %v1090_v13, 4  ;;  %v1064_v26 = vadd.f32 %v1063_v54, %v1062_v5  ;;  %v1039_v32 = vsel %vm290_vm3, %v1022_v38, 0.0 }
 0x282   :  { %v996_v7 = vadd.f32 %v995_v37, %v994_v53  ;;  %v1005_v33 = vrot.slane %v1004_v40, 4  ;;  %v1084_v46 = vmul.f32 %v2777_v56, %v2777_v56  ;;  %v1031_v21 = vrot.slane %v1030_v16, 2 }
 0x283   :  { %v1055_v44 = vrot.slane %v1054_v12, 2  ;;  %v1092_v28 = vadd.f32 %v1091_v15, %v1090_v13  ;;  %v1040_v0 = vadd.f32 %v1039_v32, %v1038_v4  ;;  %v1065_v58 = vrot.slane %v1064_v26, 4 }
 0x284   :  { %v997_v55 = vrot.slane %v996_v7, 1  ;;  %v1006_v47 = vadd.f32 %v1005_v33, %v1004_v40  ;;  %v1101_v6 = vsel %vm290_vm3, %v1084_v46, 0.0  ;;  %v1032_v62 = vadd.f32 %v1031_v21, %v1030_v16 }
 0x285   :  { %v1056_v59 = vadd.f32 %v1055_v44, %v1054_v12  ;;  %v1093_v2 = vrot.slane %v1092_v28, 2  ;;  %v1041_v5 = vrot.slane %v1040_v0, 4  ;;  %v1066_v17 = vadd.f32 %v1065_v58, %v1064_v26 }
 0x286   :  { %v998_v3 = vadd.f32 %v997_v55, %v996_v7  ;;  %v1007_v30 = vrot.slane %v1006_v47, 2  ;;  %v1102_v31 = vadd.f32 %v1101_v6, %v1100_v18  ;;  %v1033_v34 = vrot.slane %v1032_v62, 1 }
 0x287   :  { %v1057_v63 = vrot.slane %v1056_v59, 1  ;;  %v1094_v53 = vadd.f32 %v1093_v2, %v1092_v28  ;;  %v1042_v8 = vadd.f32 %v1041_v5, %v1040_v0  ;;  %v1067_v51 = vrot.slane %v1066_v17, 2 }
 0x288   :  { %v1008_v41 = vadd.f32 %v1007_v30, %v1006_v47  ;;  %v1103_v4 = vrot.slane %v1102_v31, 4  ;;  %v1034_v13 = vadd.f32 %v1033_v34, %v1032_v62 }
 0x289   :  { %v1058_v42 = vadd.f32 %v1057_v63, %v1056_v59  ;;  %v1095_v37 = vrot.slane %v1094_v53, 1  ;;  %v1043_v40 = vrot.slane %v1042_v8, 2  ;;  %v1068_v54 = vadd.f32 %v1067_v51, %v1066_v17 }
 0x28a   :  { %v1009_v38 = vrot.slane %v1008_v41, 1  ;;  %v1104_v16 = vadd.f32 %v1103_v4, %v1102_v31 }
 0x28b   :  { %v1071_v12 = vadd.f32 %v1058_v42, %v998_v3  ;;  %v1096_v15 = vadd.f32 %v1095_v37, %v1094_v53  ;;  %v1044_v7 = vadd.f32 %v1043_v40, %v1042_v8  ;;  %v1069_v26 = vrot.slane %v1068_v54, 1  ;;  %v1845_v42 = vld [vmem:[%s3207_s4] sm:$0x3] }
 0x28c   :  { %v1010_v33 = vadd.f32 %v1009_v38, %v1008_v41  ;;  %v1105_v18 = vrot.slane %v1104_v16, 2  ;;  %v3234_v38 = vld [vmem:[#allocation6_spill] sm:$0xff] }
 0x28d   :  { %v1109_v32 = vadd.f32 %v1096_v15, %v1034_v13  ;;  %v1111_v46 = vmul.f32 0.0121951215, %v1071_v12  ;;  %v1045_v21 = vrot.slane %v1044_v7, 1  ;;  %v1070_v44 = vadd.f32 %v1069_v26, %v1068_v54 }
 0x28e   :  { %v1106_v28 = vadd.f32 %v1105_v18, %v1104_v16 }
 0x28f   :  { %v1113_v0 = vmul.f32 0.0121951215, %v1109_v32  ;;  %v1115_v55 = vmul.f32 %v1111_v46, %v1111_v46  ;;  %v1046_v47 = vadd.f32 %v1045_v21, %v1044_v7  ;;  %v1072_v58 = vadd.f32 %v1070_v44, %v1010_v33 }
 0x290   :  { %v1107_v6 = vrot.slane %v1106_v28, 1 }
 0x291   :  { %v1117_v62 = vsub.f32 %v1113_v0, %v1115_v55  ;;  %v1112_v2 = vmul.f32 0.0121951215, %v1072_v58 }
 0x292   :  { %v1108_v59 = vadd.f32 %v1107_v6, %v1106_v28 }
 0x293   :  { %v1116_v3 = vmul.f32 %v1112_v2, %v1112_v2  ;;  %v1119_v30 = vmax.f32 %v1117_v62, 0.0 }
 0x294   :  { %v1110_v5 = vadd.f32 %v1108_v59, %v1046_v47 }
 0x295   :  { %v1121_v34 = vadd.f32 1e-05, %v1119_v30 }
 0x296   :  { %v1114_v17 = vmul.f32 0.0121951215, %v1110_v5 }
 0x297   :  { %1721 = vrsqrt.f32 %v1121_v34 }
 0x298   :  { %v1118_v31 = vsub.f32 %v1114_v17, %v1116_v3 }
 0x29a   :  { %v1120_v63 = vmax.f32 %v1118_v31, 0.0 }
 0x29c   :  { %v1122_v53 = vadd.f32 1e-05, %v1120_v63 }
 0x29e   :  { %1723 = vrsqrt.f32 %v1122_v53 }
 0x2a4   :  { %v1722_v8 = vpop.eup %1721 }
 0x2ab   :  { %v1724_v41 = vpop.eup %1723 }
 0x2ac   :  { %v1127_v51 = vcombine.low %v1722_v8, %v1724_v41 }
 0x2ae   :  { %v1134_v4 = vrot.slane %v1127_v51, %v2196_v29 }
 0x2b0   :  { %v1141_v13 = vrot.slane %v1134_v4, %v2196_v29 }
 0x2b2   :  { %v1143_v37 = vmul.f32 %v1845_v42, %v1141_v13 }
 0x2b4   :  { %v1148_v40 = vrot.slane %v1143_v37, %v2203_v50  ;;  %v1152_v54 = vrot.slane %v1143_v37, %v3234_v38 }
 0x2b6   :  { %v1155_v16 = vmul.f32 %v1148_v40, %v1111_v46  ;;  %v1156_v12 = vmul.f32 %v1152_v54, %v1112_v2  ;;  %v1176_v33 = vmul.f32 %v1148_v40, %v2642_v57  ;;  %v1177_v26 = vmul.f32 %v1152_v54, %v2647_v24  ;;  %v1846_v57 = vld [vmem:[%s3208_s5] sm:$0x3] }
 0x2b7   :  { %v1178_v32 = vmul.f32 %v1148_v40, %v2652_v39  ;;  %v1179_v21 = vmul.f32 %v1152_v54, %v2665_v52  ;;  %v1180_v44 = vmul.f32 %v1148_v40, %v2673_v43  ;;  %v1181_v28 = vmul.f32 %v1152_v54, %v2701_v10 }
 0x2b8   :  { %v1159_v15 = vcombine.low %v1155_v16, %v1156_v12  ;;  %v1182_v46 = vmul.f32 %v1148_v40, %v2705_v48  ;;  %v1183_v0 = vmul.f32 %v1152_v54, %v2722_v22  ;;  %v1184_v55 = vmul.f32 %v1148_v40, %v2734_v60 }
 0x2b9   :  { %v1186_v39 = vmul.f32 %v1148_v40, %v2751_v61  ;;  %v1187_v52 = vmul.f32 %v1152_v54, %v2775_v1  ;;  %v1211_v43 = vmul.f32 %v1148_v40, %v2644_v25  ;;  %v1212_v10 = vmul.f32 %v1152_v54, %v2650_v20 }
 0x2ba   :  { %v1166_v7 = vrot.slane %v1159_v15, %v2196_v29  ;;  %v1213_v48 = vmul.f32 %v1148_v40, %v2655_v27  ;;  %v1214_v22 = vmul.f32 %v1152_v54, %v2671_v9  ;;  %v1215_v58 = vmul.f32 %v1148_v40, %v2690_v45 }
 0x2bb   :  { %v1217_v61 = vmul.f32 %v1148_v40, %v2707_v23  ;;  %v1218_v1 = vmul.f32 %v1152_v54, %v2725_v19  ;;  %v1219_v25 = vmul.f32 %v1148_v40, %v2737_v35  ;;  %v1220_v20 = vmul.f32 %v1152_v54, %v2749_v49 }
 0x2bc   :  { %v1173_v18 = vrot.slane %v1166_v7, %v2196_v29  ;;  %v1185_v29 = vmul.f32 %v1152_v54, %v2745_v14  ;;  %v1216_v14 = vmul.f32 %v1152_v54, %v2703_v36  ;;  %v1222_v9 = vmul.f32 %v1152_v54, %v2777_v56 }
 0x2be   :  { %v1175_v24 = vsub.f32 %v1846_v57, %v1173_v18 }
 0x2c0   :  { %v1192_v60 = vrot.slane %v1175_v24, %v2203_v50  ;;  %v1196_v47 = vrot.slane %v1175_v24, %v3234_v38  ;;  %v1221_v50 = vmul.f32 %v1148_v40, %v2765_v11 }
 0x2c2   :  { %v2826_v6 = vadd.f32 %v1192_v60, %v1176_v33  ;;  %v2828_v27 = vadd.f32 %v1196_v47, %v1177_v26  ;;  %v2832_v62 = vadd.f32 %v1192_v60, %v1178_v32  ;;  %v2834_v45 = vadd.f32 %v1196_v47, %v1179_v21 }
 0x2c3   :  { %v2836_v36 = vadd.f32 %v1192_v60, %v1180_v44  ;;  %v2838_v23 = vadd.f32 %v1196_v47, %v1181_v28  ;;  %v2840_v19 = vadd.f32 %v1192_v60, %v1182_v46  ;;  %v2842_v35 = vadd.f32 %v1196_v47, %v1183_v0 }
 0x2c4   :  { %v2844_v49 = vadd.f32 %v1192_v60, %v1186_v39  ;;  %v2846_v59 = vadd.f32 %v1196_v47, %v1187_v52  ;;  %v2848_v2 = vadd.f32 %v1211_v43, %v1192_v60  ;;  %v2850_v11 = vadd.f32 %v1212_v10, %v1196_v47 }
 0x2c5   :  { %v2852_v56 = vadd.f32 %v1213_v48, %v1192_v60  ;;  %v2854_v5 = vadd.f32 %v1214_v22, %v1196_v47  ;;  %v2856_v3 = vadd.f32 %v1215_v58, %v1192_v60  ;;  %v2858_v30 = vadd.f32 %v1216_v14, %v1196_v47 }
 0x2c6   :  { %v2860_v17 = vadd.f32 %v1217_v61, %v1192_v60  ;;  %v2862_v31 = vadd.f32 %v1218_v1, %v1196_v47  ;;  %v2864_v34 = vadd.f32 %v1192_v60, %v1184_v55  ;;  %v2866_v63 = vadd.f32 %v1219_v25, %v1192_v60 }
 0x2c7   :  { %v2868_v53 = vadd.f32 %v1221_v50, %v1192_v60  ;;  %v2870_v8 = vadd.f32 %v1222_v9, %v1196_v47  ;;  %v1235_v41 = vmax.f32 %v2826_v6, %v2848_v2  ;;  %v1236_v51 = vmax.f32 %v2828_v27, %v2850_v11 }
 0x2c8   :  { %v1237_v4 = vmax.f32 %v2832_v62, %v2852_v56  ;;  %v1238_v13 = vmax.f32 %v2834_v45, %v2854_v5  ;;  %v2880_v42 = vadd.f32 %v1196_v47, %v1185_v29  ;;  %v2882_v37 = vadd.f32 %v1220_v20, %v1196_v47 }
 0x2c9   :  { %v1239_v40 = vmax.f32 %v2836_v36, %v2856_v3  ;;  %v2888_v38 = vmax.f32 %v2838_v23, %v2858_v30  ;;  %v2892_v54 = vmax.f32 %v2840_v19, %v2860_v17  ;;  %v2896_v16 = vmax.f32 %v2842_v35, %v2862_v31 }
 0x2ca   :  { %v2900_v12 = vmax.f32 %v2844_v49, %v2868_v53  ;;  %v2904_v15 = vmax.f32 %v2846_v59, %v2870_v8  ;;  %v1247_v7 = vsub.f32 %v2826_v6, %v1235_v41  ;;  %v1248_v33 = vsub.f32 %v2828_v27, %v1236_v51 }
 0x2cb   :  { %v1249_v26 = vsub.f32 %v2832_v62, %v1237_v4  ;;  %v1250_v18 = vsub.f32 %v2834_v45, %v1238_v13  ;;  %v2912_v32 = vmax.f32 %v2864_v34, %v2866_v63  ;;  %v1251_v21 = vsub.f32 %v2836_v36, %v1239_v40 }
 0x2cc   :  { %v2917_v44 = vmax.f32 %v2880_v42, %v2882_v37  ;;  %v1252_v28 = vsub.f32 %v2838_v23, %v2888_v38  ;;  %v1257_v46 = vsub.f32 %v2844_v49, %v2900_v12  ;;  %v1258_v0 = vsub.f32 %v2846_v59, %v2904_v15 }
 0x2cd   :  { %v1253_v55 = vsub.f32 %v2840_v19, %v2892_v54  ;;  %v1259_v57 = vmul.f32 1.442695, %v1247_v7  ;;  %v1261_v24 = vmul.f32 1.442695, %v1248_v33  ;;  %v1263_v29 = vmul.f32 1.442695, %v1249_v26 }
 0x2ce   :  { %v1254_v39 = vsub.f32 %v2842_v35, %v2896_v16  ;;  %v1265_v52 = vmul.f32 1.442695, %v1250_v18  ;;  %v1255_v43 = vsub.f32 %v2864_v34, %v2912_v32  ;;  %v1267_v10 = vmul.f32 1.442695, %v1251_v21 }
 0x2cf   :  { %1725 = vpow2.f32 %v1259_v57  ;;  %v1256_v48 = vsub.f32 %v2880_v42, %v2917_v44  ;;  %v1269_v22 = vmul.f32 1.442695, %v1252_v28  ;;  %v1271_v60 = vmul.f32 1.442695, %v1253_v55 }
 0x2d0   :  { %1727 = vpow2.f32 %v1261_v24  ;;  %v1273_v47 = vmul.f32 1.442695, %v1254_v39  ;;  %v1275_v58 = vmul.f32 1.442695, %v1255_v43  ;;  %v1283_v14 = vsub.f32 %v2848_v2, %v1235_v41 }
 0x2d1   :  { %1729 = vpow2.f32 %v1263_v29  ;;  %v1293_v61 = vsub.f32 %v2868_v53, %v2900_v12  ;;  %v1277_v1 = vmul.f32 1.442695, %v1256_v48  ;;  %v1284_v25 = vsub.f32 %v2850_v11, %v1236_v51 }
 0x2d2   :  { %1731 = vpow2.f32 %v1265_v52  ;;  %v1294_v20 = vsub.f32 %v2870_v8, %v2904_v15  ;;  %v1279_v50 = vmul.f32 1.442695, %v1257_v46  ;;  %v1285_v9 = vsub.f32 %v2852_v56, %v1237_v4 }
 0x2d3   :  { %1733 = vpow2.f32 %v1267_v10  ;;  %v1281_v7 = vmul.f32 1.442695, %v1258_v0  ;;  %v1286_v33 = vsub.f32 %v2854_v5, %v1238_v13  ;;  %v1287_v41 = vsub.f32 %v2856_v3, %v1239_v40 }
 0x2d4   :  { %1735 = vpow2.f32 %v1269_v22  ;;  %v1295_v26 = vmul.f32 1.442695, %v1283_v14  ;;  %v1288_v12 = vsub.f32 %v2858_v30, %v2888_v38  ;;  %v1297_v51 = vmul.f32 1.442695, %v1284_v25 }
 0x2d5   :  { %1737 = vpow2.f32 %v1271_v60  ;;  %v1289_v15 = vsub.f32 %v2860_v17, %v2892_v54  ;;  %v1299_v18 = vmul.f32 1.442695, %v1285_v9  ;;  %v1290_v4 = vsub.f32 %v2862_v31, %v2896_v16 }
 0x2d6   :  { %1739 = vpow2.f32 %v1273_v47  ;;  %v1301_v21 = vmul.f32 1.442695, %v1286_v33  ;;  %v1291_v13 = vsub.f32 %v2866_v63, %v2912_v32  ;;  %v1303_v40 = vmul.f32 1.442695, %v1287_v41 }
 0x2d7   :  { %1741 = vpow2.f32 %v1275_v58  ;;  %v1292_v38 = vsub.f32 %v2882_v37, %v2917_v44  ;;  %v1305_v46 = vmul.f32 1.442695, %v1288_v12  ;;  %v1307_v54 = vmul.f32 1.442695, %v1289_v15 }
 0x2d8   :  { %1743 = vpow2.f32 %v1277_v1  ;;  %v1309_v16 = vmul.f32 1.442695, %v1290_v4  ;;  %v1311_v32 = vmul.f32 1.442695, %v1291_v13  ;;  %v1315_v44 = vmul.f32 1.442695, %v1293_v61 }
 0x2d9   :  { %1745 = vpow2.f32 %v1279_v50  ;;  %v1313_v29 = vmul.f32 1.442695, %v1292_v38  ;;  %v1317_v43 = vmul.f32 1.442695, %v1294_v20 }
 0x2da   :  { %1747 = vpow2.f32 %v1281_v7 }
 0x2db   :  { %1749 = vpow2.f32 %v1295_v26 }
 0x2dc   :  { %v2950_v28 = vpop.eup %1725  ;;  %1751 = vpow2.f32 %v1297_v51 }
 0x2dd   :  { %v2954_v0 = vpop.eup %1727  ;;  %1753 = vpow2.f32 %v1299_v18 }
 0x2de   :  { %v2956_v55 = vpop.eup %1729  ;;  %1755 = vpow2.f32 %v1301_v21 }
 0x2df   :  { %v2958_v57 = vpop.eup %1731  ;;  %1757 = vpow2.f32 %v1303_v40 }
 0x2e0   :  { %v2960_v24 = vpop.eup %1733  ;;  %1759 = vpow2.f32 %v1305_v46 }
 0x2e1   :  { %v2962_v39 = vpop.eup %1735  ;;  %1761 = vpow2.f32 %v1307_v54 }
 0x2e2   :  { %v2964_v52 = vpop.eup %1737  ;;  %1763 = vpow2.f32 %v1309_v16 }
 0x2e3   :  { %v2966_v10 = vpop.eup %1739  ;;  %1765 = vpow2.f32 %v1311_v32 }
 0x2e4   :  { %v2968_v48 = vpop.eup %1741  ;;  %1767 = vpow2.f32 %v1313_v29 }
 0x2e5   :  { %v2970_v22 = vpop.eup %1743  ;;  %1769 = vpow2.f32 %v1315_v44 }
 0x2e6   :  { %v2972_v60 = vpop.eup %1745  ;;  %1771 = vpow2.f32 %v1317_v43 }
 0x2e7   :  { %v2974_v47 = vpop.eup %1747 }
 0x2e8   :  { %v1750_v58 = vpop.eup %1749 }
 0x2e9   :  { %v2976_v14 = vpop.eup %1751  ;;  %v1319_v61 = vadd.f32 %v1750_v58, %v2950_v28 }
 0x2ea   :  { %v2979_v1 = vpop.eup %1753  ;;  %v1320_v25 = vadd.f32 %v2976_v14, %v2954_v0 }
 0x2eb   :  { %v2983_v20 = vpop.eup %1755  ;;  %v1321_v50 = vadd.f32 %v2979_v1, %v2956_v55  ;;  %1773 = vrcp.f32 %v1319_v61 }
 0x2ec   :  { %v2987_v9 = vpop.eup %1757  ;;  %v1322_v7 = vadd.f32 %v2983_v20, %v2958_v57  ;;  %1775 = vrcp.f32 %v1320_v25 }
 0x2ed   :  { %v2991_v33 = vpop.eup %1759  ;;  %v1323_v41 = vadd.f32 %v2987_v9, %v2960_v24  ;;  %1777 = vrcp.f32 %v1321_v50 }
 0x2ee   :  { %v2995_v26 = vpop.eup %1761  ;;  %v1324_v12 = vadd.f32 %v2991_v33, %v2962_v39  ;;  %1779 = vrcp.f32 %v1322_v7 }
 0x2ef   :  { %v2999_v51 = vpop.eup %1763  ;;  %v1325_v15 = vadd.f32 %v2995_v26, %v2964_v52  ;;  %1781 = vrcp.f32 %v1323_v41 }
 0x2f0   :  { %v3003_v18 = vpop.eup %1765  ;;  %v1326_v4 = vadd.f32 %v2999_v51, %v2966_v10  ;;  %1783 = vrcp.f32 %v1324_v12 }
 0x2f1   :  { %v3007_v21 = vpop.eup %1767  ;;  %v1327_v13 = vadd.f32 %v3003_v18, %v2968_v48  ;;  %1785 = vrcp.f32 %v1325_v15 }
 0x2f2   :  { %v1770_v40 = vpop.eup %1769  ;;  %v1328_v38 = vadd.f32 %v3007_v21, %v2970_v22  ;;  %1787 = vrcp.f32 %v1326_v4 }
 0x2f3   :  { %v1772_v46 = vpop.eup %1771  ;;  %v1329_v54 = vadd.f32 %v1770_v40, %v2972_v60  ;;  %1789 = vrcp.f32 %v1327_v13 }
 0x2f4   :  { %v1330_v16 = vadd.f32 %v1772_v46, %v2974_v47  ;;  %1791 = vrcp.f32 %v1328_v38 }
 0x2f5   :  { %1793 = vrcp.f32 %v1329_v54 }
 0x2f6   :  { %1795 = vrcp.f32 %v1330_v16 }
 0x2f8   :  { %v1774_v32 = vpop.eup %1773 }
 0x2f9   :  { %v1776_v29 = vpop.eup %1775  ;;  %v1343_v44 = vmul.f32 %v1774_v32, %v2950_v28 }
 0x2fa   :  { %v1778_v43 = vpop.eup %1777  ;;  %v1344_v61 = vmul.f32 %v1776_v29, %v2954_v0 }
 0x2fb   :  { %v1780_v25 = vpop.eup %1779  ;;  %v1345_v50 = vmul.f32 %v1778_v43, %v2956_v55  ;;  %v1355_v7 = vmul.f32 %v1343_v44, %v2826_v6 }
 0x2fc   :  { %v1782_v41 = vpop.eup %1781  ;;  %v1346_v12 = vmul.f32 %v1780_v25, %v2958_v57  ;;  %v1356_v15 = vmul.f32 %v1344_v61, %v2828_v27  ;;  %v1379_v57 = vmul.f32 %v1774_v32, %v1750_v58 }
 0x2fd   :  { %v1784_v4 = vpop.eup %1783  ;;  %v1347_v13 = vmul.f32 %v1782_v41, %v2960_v24  ;;  %v1357_v38 = vmul.f32 %v1345_v50, %v2832_v62  ;;  %1797 = vtanh.f32 %v1355_v7  ;;  %v1380_v62 = vmul.f32 %v1776_v29, %v2976_v14 }
 0x2fe   :  { %v1786_v28 = vpop.eup %1785  ;;  %v1348_v54 = vmul.f32 %v1784_v4, %v2962_v39  ;;  %v1358_v0 = vmul.f32 %v1346_v12, %v2834_v45  ;;  %1799 = vtanh.f32 %v1356_v15 }
 0x2ff   :  { %v1788_v55 = vpop.eup %1787  ;;  %v1349_v6 = vmul.f32 %v1786_v28, %v2964_v52  ;;  %v1359_v16 = vmul.f32 %v1347_v13, %v2836_v36  ;;  %1801 = vtanh.f32 %v1357_v38  ;;  %v1381_v52 = vmul.f32 %v1778_v43, %v2979_v1 }
 0x300   :  { %v1790_v27 = vpop.eup %1789  ;;  %v1350_v44 = vmul.f32 %v1788_v55, %v2966_v10  ;;  %v1360_v24 = vmul.f32 %v1348_v54, %v2838_v23  ;;  %1803 = vtanh.f32 %v1358_v0  ;;  %v1382_v10 = vmul.f32 %v1780_v25, %v2983_v20 }
 0x301   :  { %v1792_v61 = vpop.eup %1791  ;;  %v1351_v39 = vmul.f32 %v1790_v27, %v2968_v48  ;;  %v1361_v45 = vmul.f32 %v1349_v6, %v2840_v19  ;;  %1805 = vtanh.f32 %v1359_v16  ;;  %v1391_v20 = vmul.f32 %v1379_v57, %v2848_v2 }
 0x302   :  { %v1794_v50 = vpop.eup %1793  ;;  %v1352_v36 = vmul.f32 %v1792_v61, %v2970_v22  ;;  %v1362_v58 = vmul.f32 %v1350_v44, %v2842_v35  ;;  %1807 = vtanh.f32 %v1360_v24  ;;  %v1383_v35 = vmul.f32 %v1782_v41, %v2987_v9 }
 0x303   :  { %v1796_v23 = vpop.eup %1795  ;;  %v1353_v32 = vmul.f32 %v1794_v50, %v2972_v60  ;;  %v1363_v14 = vmul.f32 %v1351_v39, %v2864_v34  ;;  %1809 = vtanh.f32 %v1361_v45  ;;  %v1389_v48 = vmul.f32 %v1794_v50, %v1770_v40  ;;  %v1424_v50 = vld [vmem:[%s3204_s0 + $0x48] sm:$0xff] }
 0x304   :  { %v1354_v19 = vmul.f32 %v1796_v23, %v2974_v47  ;;  %v1364_v29 = vmul.f32 %v1352_v36, %v2880_v42  ;;  %1811 = vtanh.f32 %v1362_v58  ;;  %v1390_v1 = vmul.f32 %v1796_v23, %v1772_v46  ;;  %v1425_v23 = vld [vmem:[%s3204_s0 + $0x50] sm:$0x1] }
 0x305   :  { %v1365_v22 = vmul.f32 %v1353_v32, %v2844_v49  ;;  %1813 = vtanh.f32 %v1363_v14  ;;  %v1384_v34 = vmul.f32 %v1784_v4, %v2991_v33  ;;  %v1392_v60 = vmul.f32 %v1380_v62, %v2850_v11 }
 0x306   :  { %v1366_v43 = vmul.f32 %v1354_v19, %v2846_v59  ;;  %1815 = vtanh.f32 %v1364_v29  ;;  %v1385_v47 = vmul.f32 %v1786_v28, %v2995_v26  ;;  %v1386_v42 = vmul.f32 %v1788_v55, %v2999_v51  ;;  %v1421_v55 = vld [vmem:[%s3204_s0 + $0x30] sm:$0xff]  ;;  %v1426_v19 = vld [vmem:[%s3204_s0 + $0x58] sm:$0x1] }
 0x307   :  { %1817 = vtanh.f32 %v1365_v22  ;;  %v1393_v40 = vmul.f32 %v1381_v52, %v2852_v56  ;;  %v1394_v49 = vmul.f32 %v1382_v10, %v2854_v5  ;;  %v1401_v9 = vmul.f32 %v1389_v48, %v2868_v53  ;;  %v1415_v56 = vld [vmem:[%s3204_s0] sm:$0xff] }
 0x308   :  { %1819 = vtanh.f32 %v1366_v43  ;;  %v1402_v2 = vmul.f32 %v1390_v1, %v2870_v8  ;;  %v1387_v59 = vmul.f32 %v1790_v27, %v3003_v18  ;;  %v1395_v33 = vmul.f32 %v1383_v35, %v2856_v3  ;;  %v1416_v8 = vld [vmem:[%s3204_s0 + $0x8] sm:$0xff]  ;;  %v1422_v27 = vld [vmem:[%s3204_s0 + $0x38] sm:$0xff]  ;;  %v1568_v43 = vld [vmem:[%s3204_s0 + $0x60] sm:$0xff] }
 0x309   :  { %1821 = vtanh.f32 %v1391_v20  ;;  %v1388_v46 = vmul.f32 %v1792_v61, %v3007_v21  ;;  %v1396_v26 = vmul.f32 %v1384_v34, %v2858_v30  ;;  %v1397_v53 = vmul.f32 %v1385_v47, %v2860_v17  ;;  %v1417_v30 = vld [vmem:[%s3204_s0 + $0x10] sm:$0xff]  ;;  %v1418_v17 = vld [vmem:[%s3204_s0 + $0x18] sm:$0xff]  ;;  %v1423_v61 = vld [vmem:[%s3204_s0 + $0x40] sm:$0xff] }
 0x30a   :  { %v1798_v11 = vpop.eup %1797  ;;  %1823 = vtanh.f32 %v1392_v60  ;;  %v1398_v18 = vmul.f32 %v1386_v42, %v2862_v31  ;;  %v1399_v7 = vmul.f32 %v1387_v59, %v2866_v63  ;;  %v1419_v31 = vld [vmem:[%s3204_s0 + $0x20] sm:$0xff]  ;;  %v1420_v63 = vld [vmem:[%s3204_s0 + $0x28] sm:$0xff] }
 0x30b   :  { %v1800_v5 = vpop.eup %1799  ;;  %1825 = vtanh.f32 %v1393_v40  ;;  %v1427_v3 = vmul.f32 -1.0, %v1798_v11  ;;  %v1400_v4 = vmul.f32 %v1388_v46, %v2882_v37  ;;  %v1569_v47 = vld [vmem:[%s3204_s0 + $0x68] sm:$0xff] }
 0x30c   :  { %v1802_v51 = vpop.eup %1801  ;;  %1827 = vtanh.f32 %v1394_v49  ;;  %v1428_v21 = vmul.f32 -1.0, %v1800_v5 }
 0x30d   :  { %v1804_v25 = vpop.eup %1803  ;;  %1829 = vtanh.f32 %v1395_v33  ;;  %v1429_v41 = vmul.f32 -1.0, %v1802_v51  ;;  %v1439_v12 = vadd.f32 %v1427_v3, %v1415_v56  ;;  %v1571_v33 = vld [vmem:[%s3204_s0 + $0x78] sm:$0xff]  ;;  %v1572_v56 = vld [vmem:[%s3204_s0 + $0x80] sm:$0xff]  ;;  %v1573_v3 = vld [vmem:[%s3204_s0 + $0x88] sm:$0xff] }
 0x30e   :  { %v1806_v15 = vpop.eup %1805  ;;  %1831 = vtanh.f32 %v1396_v26  ;;  %v1430_v13 = vmul.f32 -1.0, %v1804_v25  ;;  %v1440_v38 = vadd.f32 %v1428_v21, %v1416_v8  ;;  %v1574_v21 = vld [vmem:[%s3204_s0 + $0x90] sm:$0xff] }
 0x30f   :  { %v1808_v28 = vpop.eup %1807  ;;  %1833 = vtanh.f32 %v1397_v53  ;;  %v1431_v54 = vmul.f32 -1.0, %v1806_v15  ;;  %v1441_v0 = vadd.f32 %v1429_v41, %v1417_v30  ;;  %1451 = vst [vmem:[%s3211_s7] sm:$0xff] %v1439_v12  ;;  %v1575_v41 = vld [vmem:[%s3204_s0 + $0x98] sm:$0xff] }
 0x310   :  { %v1810_v37 = vpop.eup %1809  ;;  %1835 = vtanh.f32 %v1398_v18  ;;  %v1432_v6 = vmul.f32 -1.0, %v1808_v28  ;;  %v1442_v16 = vadd.f32 %v1430_v13, %v1418_v17  ;;  %1452 = vst [vmem:[%s3211_s7 + $0x8] sm:$0xff] %v1440_v38 }
 0x311   :  { %v1812_v57 = vpop.eup %1811  ;;  %1837 = vtanh.f32 %v1399_v7  ;;  %v1433_v44 = vmul.f32 -1.0, %v1810_v37  ;;  %v1443_v24 = vadd.f32 %v1431_v54, %v1419_v31  ;;  %1453 = vst [vmem:[%s3211_s7 + $0x10] sm:$0xff] %v1441_v0  ;;  %v1576_v31 = vld [vmem:[%s3204_s0 + $0xa0] sm:$0xff] }
 0x312   :  { %v1814_v62 = vpop.eup %1813  ;;  %1839 = vtanh.f32 %v1400_v4  ;;  %v1434_v39 = vmul.f32 -1.0, %v1812_v57  ;;  %v1444_v45 = vadd.f32 %v1432_v6, %v1420_v63  ;;  %1454 = vst [vmem:[%s3211_s7 + $0x18] sm:$0xff] %v1442_v16  ;;  %v1577_v63 = vld [vmem:[%s3204_s0 + $0xa8] sm:$0xff] }
 0x313   :  { %v1816_v52 = vpop.eup %1815  ;;  %1841 = vtanh.f32 %v1401_v9  ;;  %v1435_v36 = vmul.f32 -1.0, %v1814_v62  ;;  %v1445_v58 = vadd.f32 %v1433_v44, %v1421_v55  ;;  %1455 = vst [vmem:[%s3211_s7 + $0x20] sm:$0xff] %v1443_v24  ;;  %v1570_v9 = vld [vmem:[%s3204_s0 + $0x70] sm:$0xff] }
 0x314   :  { %v1818_v10 = vpop.eup %1817  ;;  %1843 = vtanh.f32 %v1402_v2  ;;  %v1436_v32 = vmul.f32 -1.0, %v1816_v52  ;;  %v1446_v14 = vadd.f32 %v1434_v39, %v1422_v27  ;;  %1456 = vst [vmem:[%s3211_s7 + $0x28] sm:$0xff] %v1444_v45  ;;  %v1578_v55 = vld [vmem:[%s3204_s0 + $0xb0] sm:$0x1]  ;;  %v1579_v27 = vld [vmem:[%s3204_s0 + $0xb8] sm:$0x1] }
 0x315   :  { %v1820_v48 = vpop.eup %1819  ;;  %v1437_v29 = vmul.f32 -1.0, %v1818_v10  ;;  %v1447_v1 = vadd.f32 %v1435_v36, %v1423_v61  ;;  %1457 = vst [vmem:[%s3211_s7 + $0x30] sm:$0xff] %v1445_v58 }
 0x316   :  { %v1822_v22 = vpop.eup %1821  ;;  %v1438_v35 = vmul.f32 -1.0, %v1820_v48  ;;  %v1448_v20 = vadd.f32 %v1436_v32, %v1424_v50  ;;  %1458 = vst [vmem:[%s3211_s7 + $0x38] sm:$0xff] %v1446_v14 }
 0x317   :  { %v1824_v34 = vpop.eup %1823  ;;  %v1449_v60 = vadd.f32 %v1437_v29, %v1425_v23  ;;  %1459 = vst [vmem:[%s3211_s7 + $0x40] sm:$0xff] %v1447_v1  ;;  %v1475_v42 = vmul.f32 -1.0, %v1822_v22 }
 0x318   :  { %v1826_v40 = vpop.eup %1825  ;;  %v1450_v49 = vadd.f32 %v1438_v35, %v1426_v19  ;;  %1460 = vst [vmem:[%s3211_s7 + $0x48] sm:$0xff] %v1448_v20  ;;  %v1476_v2 = vmul.f32 -1.0, %v1824_v34 }
 0x319   :  { %v1828_v59 = vpop.eup %1827  ;;  %1461 = vst [vmem:[%s3211_s7 + $0x50] sm:$0x1] %v1449_v60  ;;  %v1477_v11 = vmul.f32 -1.0, %v1826_v40  ;;  %v1487_v46 = vadd.f32 %v1568_v43, %v1475_v42 }
 0x31a   :  { %v1830_v26 = vpop.eup %1829  ;;  %1462 = vst [vmem:[%s3211_s7 + $0x58] sm:$0x1] %v1450_v49  ;;  %v1478_v5 = vmul.f32 -1.0, %v1828_v59  ;;  %v1488_v53 = vadd.f32 %v1569_v47, %v1476_v2 }
 0x31b   :  { %v1832_v8 = vpop.eup %1831  ;;  %v1479_v51 = vmul.f32 -1.0, %v1830_v26  ;;  %v1489_v18 = vadd.f32 %v1570_v9, %v1477_v11  ;;  %1580 = vst [vmem:[%s3211_s7 + $0x60] sm:$0xff] %v1487_v46 }
 0x31c   :  { %v1834_v30 = vpop.eup %1833  ;;  %v1480_v25 = vmul.f32 -1.0, %v1832_v8  ;;  %v1490_v7 = vadd.f32 %v1571_v33, %v1478_v5  ;;  %1581 = vst [vmem:[%s3211_s7 + $0x68] sm:$0xff] %v1488_v53 }
 0x31d   :  { %v1836_v17 = vpop.eup %1835  ;;  %v1481_v12 = vmul.f32 -1.0, %v1834_v30  ;;  %v1491_v15 = vadd.f32 %v1572_v56, %v1479_v51  ;;  %1582 = vst [vmem:[%s3211_s7 + $0x70] sm:$0xff] %v1489_v18 }
 0x31e   :  { %v1838_v4 = vpop.eup %1837  ;;  %v1482_v13 = vmul.f32 -1.0, %v1836_v17  ;;  %v1492_v38 = vadd.f32 %v1573_v3, %v1480_v25  ;;  %1583 = vst [vmem:[%s3211_s7 + $0x78] sm:$0xff] %v1490_v7 }
 0x31f   :  { %v1840_v28 = vpop.eup %1839  ;;  %v1483_v54 = vmul.f32 -1.0, %v1838_v4  ;;  %v1493_v0 = vadd.f32 %v1574_v21, %v1481_v12  ;;  %1584 = vst [vmem:[%s3211_s7 + $0x80] sm:$0xff] %v1491_v15 }
 0x320   :  { %v1842_v37 = vpop.eup %1841  ;;  %v1484_v6 = vmul.f32 -1.0, %v1840_v28  ;;  %v1494_v16 = vadd.f32 %v1575_v41, %v1482_v13  ;;  %1585 = vst [vmem:[%s3211_s7 + $0x88] sm:$0xff] %v1492_v38 }
 0x321   :  { %v1844_v57 = vpop.eup %1843  ;;  %v1485_v44 = vmul.f32 -1.0, %v1842_v37  ;;  %v1495_v24 = vadd.f32 %v1576_v31, %v1483_v54  ;;  %1586 = vst [vmem:[%s3211_s7 + $0x90] sm:$0xff] %v1493_v0 }
 0x322   :  { %v1486_v62 = vmul.f32 -1.0, %v1844_v57  ;;  %v1496_v61 = vadd.f32 %v1577_v63, %v1484_v6  ;;  %1587 = vst [vmem:[%s3211_s7 + $0x98] sm:$0xff] %v1494_v16 }
 0x323   :  { %v1497_v39 = vadd.f32 %v1578_v55, %v1485_v44  ;;  %1588 = vst [vmem:[%s3211_s7 + $0xa0] sm:$0xff] %v1495_v24 }
 0x324   :  { %v1498_v45 = vadd.f32 %v1579_v27, %v1486_v62  ;;  %1589 = vst [vmem:[%s3211_s7 + $0xa8] sm:$0xff] %v1496_v61 }
 0x325   :  { %1590 = vst [vmem:[%s3211_s7 + $0xb0] sm:$0x1] %v1497_v39 }
 0x326   :  { %1591 = vst [vmem:[%s3211_s7 + $0xb8] sm:$0x1] %v1498_v45 }

</bundles_post_ra>
